<compile_context>
chip_gen: v6e
topology: v6e:2x2x1
jax: 0.10.0
libtpu: 0.0.40
codegen_flags: <defaults>
</compile_context>

<pallas_src>
import jax
import jax.numpy as jnp
from jax.experimental import pallas as pl
from jax.experimental.pallas import tpu as pltpu


# ----------------------------- Pallas kernels ------------------------------

def _conv_gdn_kernel(x_ref, w_ref, b_ref, gt_ref, beta_ref, o_ref):
    # conv as matmul (bf16 in, f32 accumulate) + bias, fused with GDN:
    #   y = patches @ w + b
    #   o[:, i] = y[:, i] / sqrt(beta[i] + sum_j gamma[i, j] * y[:, j]^2)
    y = jnp.dot(x_ref[...], w_ref[...], preferred_element_type=jnp.float32)
    y = y + b_ref[...]
    # GDN normalization matmul with bf16 operands (f32 accumulation); y*y >= 0
    # and beta = 1 dominates the norm so bf16 rounding here is harmless.
    y2 = (y * y).astype(gt_ref.dtype)
    norm = jnp.dot(y2, gt_ref[...], preferred_element_type=jnp.float32)
    norm = norm + beta_ref[...]
    # beta > 0 keeps rsqrt finite for all real rows; garbage rows from a
    # ragged last block are masked on store, so NaNs there are never visible.
    o_ref[...] = (y * jax.lax.rsqrt(norm)).astype(o_ref.dtype)


def _conv_kernel(x_ref, w_ref, o_ref):
    # conv3: matmul only (no bias, no GDN).
    o_ref[...] = jnp.dot(
        x_ref[...], w_ref[...], preferred_element_type=jnp.float32
    ).astype(o_ref.dtype)


# ------------------------------ tiling helpers ------------------------------

_TILE_BYTES = 4 << 20     # per input buffer (x2 for double buffering)
_TILE_M_CAP = 2048        # measured roofline knee is ~512-1024 block dim


def _round_up(x, m):
    return (x + m - 1) // m * m


def _choose_tile_m(m, k, itemsize):
    """Pick an M tile: VMEM-bounded, sublane-tile aligned, and giving >=2 grid
    steps when M allows so the 'parallel' axis can use both v7x TensorCores."""
    m8 = _round_up(max(m, 1), 8)
    align = 16 if itemsize < 4 else 8          # bf16 native sublane tile is 16
    cap = max(align,
              min(_TILE_M_CAP, (_TILE_BYTES // (k * itemsize)) // align * align))
    half = max(align, _round_up((m8 + 1) // 2, align))
    return min(cap, half, m8)


# --------------------------- fused layer wrappers ---------------------------

def _fused_conv_gdn(patches, w2d, b, gt, beta, out_dtype):
    """patches [M, K] bf16, w2d [K, C] bf16, b/beta [1, C] f32, gt [C, C] bf16."""
    m, k = patches.shape
    _, c = w2d.shape
    tile_m = _choose_tile_m(m, k, patches.dtype.itemsize)
    return pl.pallas_call(
        _conv_gdn_kernel,
        out_shape=jax.ShapeDtypeStruct((m, c), out_dtype),
        grid=(pl.cdiv(m, tile_m),),
        in_specs=[
            pl.BlockSpec((tile_m, k), lambda i: (i, 0)),   # patches tile
            pl.BlockSpec((k, c), lambda i: (0, 0)),        # conv weights (resident)
            pl.BlockSpec((1, c), lambda i: (0, 0)),        # bias
            pl.BlockSpec((c, c), lambda i: (0, 0)),        # gamma^T
            pl.BlockSpec((1, c), lambda i: (0, 0)),        # beta
        ],
        out_specs=pl.BlockSpec((tile_m, c), lambda i: (i, 0)),
        compiler_params=pltpu.CompilerParams(
            dimension_semantics=("parallel",)),
    )(patches, w2d, b, gt, beta)


def _fused_conv(patches, w2d, out_dtype):
    m, k = patches.shape
    _, c = w2d.shape
    tile_m = _choose_tile_m(m, k, patches.dtype.itemsize)
    return pl.pallas_call(
        _conv_kernel,
        out_shape=jax.ShapeDtypeStruct((m, c), out_dtype),
        grid=(pl.cdiv(m, tile_m),),
        in_specs=[
            pl.BlockSpec((tile_m, k), lambda i: (i, 0)),
            pl.BlockSpec((k, c), lambda i: (0, 0)),
        ],
        out_specs=pl.BlockSpec((tile_m, c), lambda i: (i, 0)),
        compiler_params=pltpu.CompilerParams(
            dimension_semantics=("parallel",)),
    )(patches, w2d)


# ------------------------------- conv glue ----------------------------------

def _im2col(x_nhwc, kh, kw, stride, pad):
    """Patch extraction in the input's dtype (bf16 here, so the materialized
    patches are already the kernel's operand dtype; no extra pad/cast pass)."""
    n, h, w, c = x_nhwc.shape
    oh = (h + 2 * pad - kh) // stride + 1
    ow = (w + 2 * pad - kw) // stride + 1
    xp = jnp.pad(x_nhwc, ((0, 0), (pad, pad), (pad, pad), (0, 0)))
    cols = []
    for i in range(kh):
        for j in range(kw):
            cols.append(
                xp[:, i:i + stride * (oh - 1) + 1:stride,
                      j:j + stride * (ow - 1) + 1:stride, :]
            )
    # [N, OH, OW, KH*KW, C] -> [N*OH*OW, KH*KW*C]   (order: kh, kw, cin)
    patches = jnp.stack(cols, axis=3).reshape(n * oh * ow, kh * kw * c)
    return patches, (n, oh, ow)


# ------------------------------ Analysis net --------------------------------

@jax.jit
def analysis_forward(x_nchw, p):
    """x: [N, 3, H, W] f32 -> [N, C, H//16, W//16] f32 (p = prepare_params(...))."""
    # NCHW f32 -> NHWC bf16 once; all patch/activation HBM traffic is bf16.
    x = jnp.transpose(x_nchw, (0, 2, 3, 1)).astype(jnp.bfloat16)

    patches, (n, oh, ow) = _im2col(x, 9, 9, 4, 4)
    x = _fused_conv_gdn(patches, p["w1"], p["b1"], p["gt1"], p["beta1"],
                        out_dtype=jnp.bfloat16)
    x = x.reshape(n, oh, ow, -1)

    patches, (n, oh, ow) = _im2col(x, 5, 5, 2, 2)
    x = _fused_conv_gdn(patches, p["w2"], p["b2"], p["gt2"], p["beta2"],
                        out_dtype=jnp.bfloat16)
    x = x.reshape(n, oh, ow, -1)

    patches, (n, oh, ow) = _im2col(x, 5, 5, 2, 2)
    x = _fused_conv(patches, p["w3"], out_dtype=jnp.float32)
    x = x.reshape(n, oh, ow, -1)

    return jnp.transpose(x, (0, 3, 1, 2))  # -> NCHW


# ----------------------- param init / kernel repacking ----------------------

def init_params(key, out_channel_n=128):
    ks = jax.random.split(key, 6)

    def conv_w(k, cout, cin, kh, kw):
        fan_in = cin * kh * kw
        return jax.random.normal(k, (cout, cin, kh, kw), jnp.float32) / jnp.sqrt(fan_in)

    c = out_channel_n
    return {
        "w1": conv_w(ks[0], c, 3, 9, 9),
        "b1": 0.01 * jax.random.normal(ks[1], (c,), jnp.float32),
        "w2": conv_w(ks[2], c, c, 5, 5),
        "b2": 0.01 * jax.random.normal(ks[3], (c,), jnp.float32),
        "w3": conv_w(ks[4], c, c, 5, 5),
        # GDN effective parameters (post-reparam: beta = 1, gamma = 0.1*I + eps).
        "beta1": jnp.ones((c,), jnp.float32),
        "gamma1": 0.1 * jnp.eye(c, dtype=jnp.float32) + 1e-3,
        "beta2": jnp.ones((c,), jnp.float32),
        "gamma2": 0.1 * jnp.eye(c, dtype=jnp.float32) + 1e-3,
    }


def prepare_params(params):
    """One-time repack: [Cout,Cin,KH,KW] -> [K, Cout] bf16 (no K pad needed),
    gamma^T in bf16 (GDN matmul operand), bias/beta as (1, C) f32."""
    def prep_w(w_oihw):
        cout, cin, kh, kw = w_oihw.shape
        w2d = jnp.transpose(w_oihw, (2, 3, 1, 0)).reshape(kh * kw * cin, cout)
        return w2d.astype(jnp.bfloat16)

    c = params["w1"].shape[0]
    return {
        "w1": prep_w(params["w1"]),
        "b1": params["b1"].reshape(1, c).astype(jnp.float32),
        "gt1": params["gamma1"].T.astype(jnp.bfloat16),
        "beta1": params["beta1"].reshape(1, c).astype(jnp.float32),
        "w2": prep_w(params["w2"]),
        "b2": params["b2"].reshape(1, c).astype(jnp.float32),
        "gt2": params["gamma2"].T.astype(jnp.bfloat16),
        "beta2": params["beta2"].reshape(1, c).astype(jnp.float32),
        "w3": prep_w(params["w3"]),
    }


# ----------------------- pure-JAX reference (sanity) ------------------------

def _conv_ref(x_nhwc, w_oihw, b, stride, pad):
    w_hwio = jnp.transpose(w_oihw, (2, 3, 1, 0))
    y = jax.lax.conv_general_dilated(
        x_nhwc, w_hwio, (stride, stride), [(pad, pad), (pad, pad)],
        dimension_numbers=("NHWC", "HWIO", "NHWC"))
    return y if b is None else y + b


def _gdn_ref(x_nhwc, gamma, beta):
    norm = jnp.einsum("nhwc,oc->nhwo", x_nhwc * x_nhwc, gamma) + beta
    return x_nhwc / jnp.sqrt(norm)


def analysis_reference(x_nchw, params):
    x = jnp.transpose(x_nchw, (0, 2, 3, 1))
    x = _conv_ref(x, params["w1"], params["b1"], 4, 4)
    x = _gdn_ref(x, params["gamma1"], params["beta1"])
    x = _conv_ref(x, params["w2"], params["b2"], 2, 2)
    x = _gdn_ref(x, params["gamma2"], params["beta2"])
    x = _conv_ref(x, params["w3"], None, 2, 2)
    return jnp.transpose(x, (0, 3, 1, 2))


# ---------------------------------- main -------------------------------------

if __name__ == "__main__":
    out_channel_n = 128  # module default
    key = jax.random.PRNGKey(0)
    k_x, k_p = jax.random.split(key)

    x = jax.random.normal(k_x, (2, 3, 32, 32), jnp.float32)  # NCHW, like PyTorch
    params = init_params(k_p, out_channel_n)
    prep = prepare_params(params)

    y = analysis_forward(x, prep)
    y = jax.block_until_ready(y)

    assert y.shape == (2, out_channel_n, 2, 2), y.shape
    assert y.dtype == jnp.float32

    y_ref = analysis_reference(x, params)
    max_err = float(jnp.max(jnp.abs(y - y_ref)))
    assert max_err < 5e-2, f"max abs error vs reference: {max_err}"

    print("KERNEL_OK")
</pallas_src>

<mosaic_0001>
module attributes {stable_mosaic.version = 11 : i64} {
  func.func @_conv_gdn_kernel(%arg0: i32, %arg1: memref<64x243xbf16, #tpu.memory_space<vmem>>, %arg2: memref<243x128xbf16, #tpu.memory_space<vmem>>, %arg3: memref<1x128xf32, #tpu.memory_space<vmem>>, %arg4: memref<128x128xbf16, #tpu.memory_space<vmem>>, %arg5: memref<1x128xf32, #tpu.memory_space<vmem>>, %arg6: memref<64x128xbf16, #tpu.memory_space<vmem>>) attributes {dimension_semantics = [#tpu.dimension_semantics<parallel>], iteration_bounds = array<i64: 2>, scalar_prefetch = 0 : i64, scratch_operands = 0 : i64, tpu.core_type = #tpu.core_type<tc>, window_params = [{transform_indices = @transform_0, window_bounds = array<i64: 64, 243>}, {pipeline_mode = #tpu.pipeline_mode<synchronous>, transform_indices = @transform_1, window_bounds = array<i64: 243, 128>}, {pipeline_mode = #tpu.pipeline_mode<synchronous>, transform_indices = @transform_2, window_bounds = array<i64: 1, 128>}, {pipeline_mode = #tpu.pipeline_mode<synchronous>, transform_indices = @transform_3, window_bounds = array<i64: 128, 128>}, {pipeline_mode = #tpu.pipeline_mode<synchronous>, transform_indices = @transform_4, window_bounds = array<i64: 1, 128>}, {transform_indices = @transform_5, window_bounds = array<i64: 64, 128>}]} {
    %c0 = arith.constant 0 : index
    %c0_0 = arith.constant 0 : index
    %0 = vector.load %arg1[%c0, %c0_0] : memref<64x243xbf16, #tpu.memory_space<vmem>>, vector<64x243xbf16>
    %c0_1 = arith.constant 0 : index
    %c0_2 = arith.constant 0 : index
    %1 = vector.load %arg2[%c0_1, %c0_2] : memref<243x128xbf16, #tpu.memory_space<vmem>>, vector<243x128xbf16>
    %cst = arith.constant dense<0.000000e+00> : vector<64x128xf32>
    %2 = tpu.matmul %0, %1, %cst {dimension_numbers = #tpu.dot_dimension_numbers<[1], [0], [0], [1], [0, 0, 1, 1], [], []>} : vector<64x243xbf16>, vector<243x128xbf16>, vector<64x128xf32> -> vector<64x128xf32>
    %c0_3 = arith.constant 0 : index
    %c0_4 = arith.constant 0 : index
    %3 = vector.load %arg3[%c0_3, %c0_4] : memref<1x128xf32, #tpu.memory_space<vmem>>, vector<1x128xf32>
    %4 = vector.broadcast %3 : vector<1x128xf32> to vector<64x128xf32>
    %5 = arith.addf %2, %4 : vector<64x128xf32>
    %6 = arith.mulf %5, %5 : vector<64x128xf32>
    %7 = arith.truncf %6 : vector<64x128xf32> to vector<64x128xbf16>
    %c0_5 = arith.constant 0 : index
    %c0_6 = arith.constant 0 : index
    %8 = vector.load %arg4[%c0_5, %c0_6] : memref<128x128xbf16, #tpu.memory_space<vmem>>, vector<128x128xbf16>
    %cst_7 = arith.constant dense<0.000000e+00> : vector<64x128xf32>
    %9 = tpu.matmul %7, %8, %cst_7 {dimension_numbers = #tpu.dot_dimension_numbers<[1], [0], [0], [1], [0, 0, 1, 1], [], []>} : vector<64x128xbf16>, vector<128x128xbf16>, vector<64x128xf32> -> vector<64x128xf32>
    %c0_8 = arith.constant 0 : index
    %c0_9 = arith.constant 0 : index
    %10 = vector.load %arg5[%c0_8, %c0_9] : memref<1x128xf32, #tpu.memory_space<vmem>>, vector<1x128xf32>
    %11 = vector.broadcast %10 : vector<1x128xf32> to vector<64x128xf32>
    %12 = arith.addf %9, %11 : vector<64x128xf32>
    %13 = math.rsqrt %12 : vector<64x128xf32>
    %14 = arith.mulf %5, %13 : vector<64x128xf32>
    %15 = arith.truncf %14 : vector<64x128xf32> to vector<64x128xbf16>
    %c0_10 = arith.constant 0 : index
    %c0_11 = arith.constant 0 : index
    %16 = vector.load %arg6[%c0_10, %c0_11] : memref<64x128xbf16, #tpu.memory_space<vmem>>, vector<64x128xbf16>
    tpu.vector_store %arg6[%c0_10, %c0_11], %15 {strides = array<i32>} : memref<64x128xbf16, #tpu.memory_space<vmem>>, vector<64x128xbf16>,
    return
  }
  func.func @transform_0(%arg0: i32) -> (i32, i32) {
    %c0_i32 = arith.constant 0 : i32
    %c0_i32_0 = arith.constant 0 : i32
    return %arg0, %c0_i32 : i32, i32
  }
  func.func @transform_1(%arg0: i32) -> (i32, i32) {
    %c0_i32 = arith.constant 0 : i32
    %c0_i32_0 = arith.constant 0 : i32
    %c0_i32_1 = arith.constant 0 : i32
    return %c0_i32, %c0_i32_0 : i32, i32
  }
  func.func @transform_2(%arg0: i32) -> (i32, i32) {
    %c0_i32 = arith.constant 0 : i32
    %c0_i32_0 = arith.constant 0 : i32
    %c0_i32_1 = arith.constant 0 : i32
    return %c0_i32, %c0_i32_0 : i32, i32
  }
  func.func @transform_3(%arg0: i32) -> (i32, i32) {
    %c0_i32 = arith.constant 0 : i32
    %c0_i32_0 = arith.constant 0 : i32
    %c0_i32_1 = arith.constant 0 : i32
    return %c0_i32, %c0_i32_0 : i32, i32
  }
  func.func @transform_4(%arg0: i32) -> (i32, i32) {
    %c0_i32 = arith.constant 0 : i32
    %c0_i32_0 = arith.constant 0 : i32
    %c0_i32_1 = arith.constant 0 : i32
    return %c0_i32, %c0_i32_0 : i32, i32
  }
  func.func @transform_5(%arg0: i32) -> (i32, i32) {
    %c0_i32 = arith.constant 0 : i32
    %c0_i32_0 = arith.constant 0 : i32
    return %arg0, %c0_i32 : i32, i32
  }
}

module attributes {stable_mosaic.version = 11 : i64} {
  func.func @_conv_gdn_kernel(%arg0: i32, %arg1: memref<16x3200xbf16, #tpu.memory_space<vmem>>, %arg2: memref<3200x128xbf16, #tpu.memory_space<vmem>>, %arg3: memref<1x128xf32, #tpu.memory_space<vmem>>, %arg4: memref<128x128xbf16, #tpu.memory_space<vmem>>, %arg5: memref<1x128xf32, #tpu.memory_space<vmem>>, %arg6: memref<16x128xbf16, #tpu.memory_space<vmem>>) attributes {dimension_semantics = [#tpu.dimension_semantics<parallel>], iteration_bounds = array<i64: 2>, scalar_prefetch = 0 : i64, scratch_operands = 0 : i64, tpu.core_type = #tpu.core_type<tc>, window_params = [{transform_indices = @transform_0, window_bounds = array<i64: 16, 3200>}, {pipeline_mode = #tpu.pipeline_mode<synchronous>, transform_indices = @transform_1, window_bounds = array<i64: 3200, 128>}, {pipeline_mode = #tpu.pipeline_mode<synchronous>, transform_indices = @transform_2, window_bounds = array<i64: 1, 128>}, {pipeline_mode = #tpu.pipeline_mode<synchronous>, transform_indices = @transform_3, window_bounds = array<i64: 128, 128>}, {pipeline_mode = #tpu.pipeline_mode<synchronous>, transform_indices = @transform_4, window_bounds = array<i64: 1, 128>}, {transform_indices = @transform_5, window_bounds = array<i64: 16, 128>}]} {
    %c0 = arith.constant 0 : index
    %c0_0 = arith.constant 0 : index
    %0 = vector.load %arg1[%c0, %c0_0] : memref<16x3200xbf16, #tpu.memory_space<vmem>>, vector<16x3200xbf16>
    %c0_1 = arith.constant 0 : index
    %c0_2 = arith.constant 0 : index
    %1 = vector.load %arg2[%c0_1, %c0_2] : memref<3200x128xbf16, #tpu.memory_space<vmem>>, vector<3200x128xbf16>
    %cst = arith.constant dense<0.000000e+00> : vector<16x128xf32>
    %2 = tpu.matmul %0, %1, %cst {dimension_numbers = #tpu.dot_dimension_numbers<[1], [0], [0], [1], [0, 0, 1, 1], [], []>} : vector<16x3200xbf16>, vector<3200x128xbf16>, vector<16x128xf32> -> vector<16x128xf32>
    %c0_3 = arith.constant 0 : index
    %c0_4 = arith.constant 0 : index
    %3 = vector.load %arg3[%c0_3, %c0_4] : memref<1x128xf32, #tpu.memory_space<vmem>>, vector<1x128xf32>
    %4 = vector.broadcast %3 : vector<1x128xf32> to vector<16x128xf32>
    %5 = arith.addf %2, %4 : vector<16x128xf32>
    %6 = arith.mulf %5, %5 : vector<16x128xf32>
    %7 = arith.truncf %6 : vector<16x128xf32> to vector<16x128xbf16>
    %c0_5 = arith.constant 0 : index
    %c0_6 = arith.constant 0 : index
    %8 = vector.load %arg4[%c0_5, %c0_6] : memref<128x128xbf16, #tpu.memory_space<vmem>>, vector<128x128xbf16>
    %cst_7 = arith.constant dense<0.000000e+00> : vector<16x128xf32>
    %9 = tpu.matmul %7, %8, %cst_7 {dimension_numbers = #tpu.dot_dimension_numbers<[1], [0], [0], [1], [0, 0, 1, 1], [], []>} : vector<16x128xbf16>, vector<128x128xbf16>, vector<16x128xf32> -> vector<16x128xf32>
    %c0_8 = arith.constant 0 : index
    %c0_9 = arith.constant 0 : index
    %10 = vector.load %arg5[%c0_8, %c0_9] : memref<1x128xf32, #tpu.memory_space<vmem>>, vector<1x128xf32>
    %11 = vector.broadcast %10 : vector<1x128xf32> to vector<16x128xf32>
    %12 = arith.addf %9, %11 : vector<16x128xf32>
    %13 = math.rsqrt %12 : vector<16x128xf32>
    %14 = arith.mulf %5, %13 : vector<16x128xf32>
    %15 = arith.truncf %14 : vector<16x128xf32> to vector<16x128xbf16>
    %c0_10 = arith.constant 0 : index
    %c0_11 = arith.constant 0 : index
    %16 = vector.load %arg6[%c0_10, %c0_11] : memref<16x128xbf16, #tpu.memory_space<vmem>>, vector<16x128xbf16>
    tpu.vector_store %arg6[%c0_10, %c0_11], %15 {strides = array<i32>} : memref<16x128xbf16, #tpu.memory_space<vmem>>, vector<16x128xbf16>,
    return
  }
  func.func @transform_0(%arg0: i32) -> (i32, i32) {
    %c0_i32 = arith.constant 0 : i32
    %c0_i32_0 = arith.constant 0 : i32
    return %arg0, %c0_i32 : i32, i32
  }
  func.func @transform_1(%arg0: i32) -> (i32, i32) {
    %c0_i32 = arith.constant 0 : i32
    %c0_i32_0 = arith.constant 0 : i32
    %c0_i32_1 = arith.constant 0 : i32
    return %c0_i32, %c0_i32_0 : i32, i32
  }
  func.func @transform_2(%arg0: i32) -> (i32, i32) {
    %c0_i32 = arith.constant 0 : i32
    %c0_i32_0 = arith.constant 0 : i32
    %c0_i32_1 = arith.constant 0 : i32
    return %c0_i32, %c0_i32_0 : i32, i32
  }
  func.func @transform_3(%arg0: i32) -> (i32, i32) {
    %c0_i32 = arith.constant 0 : i32
    %c0_i32_0 = arith.constant 0 : i32
    %c0_i32_1 = arith.constant 0 : i32
    return %c0_i32, %c0_i32_0 : i32, i32
  }
  func.func @transform_4(%arg0: i32) -> (i32, i32) {
    %c0_i32 = arith.constant 0 : i32
    %c0_i32_0 = arith.constant 0 : i32
    %c0_i32_1 = arith.constant 0 : i32
    return %c0_i32, %c0_i32_0 : i32, i32
  }
  func.func @transform_5(%arg0: i32) -> (i32, i32) {
    %c0_i32 = arith.constant 0 : i32
    %c0_i32_0 = arith.constant 0 : i32
    return %arg0, %c0_i32 : i32, i32
  }
}

module attributes {stable_mosaic.version = 11 : i64} {
  func.func @_conv_kernel(%arg0: i32, %arg1: memref<8x3200xbf16, #tpu.memory_space<vmem>>, %arg2: memref<3200x128xbf16, #tpu.memory_space<vmem>>, %arg3: memref<8x128xf32, #tpu.memory_space<vmem>>) attributes {dimension_semantics = [#tpu.dimension_semantics<parallel>], iteration_bounds = array<i64: 1>, scalar_prefetch = 0 : i64, scratch_operands = 0 : i64, tpu.core_type = #tpu.core_type<tc>, window_params = [{transform_indices = @transform_0, window_bounds = array<i64: 8, 3200>}, {pipeline_mode = #tpu.pipeline_mode<synchronous>, transform_indices = @transform_1, window_bounds = array<i64: 3200, 128>}, {transform_indices = @transform_2, window_bounds = array<i64: 8, 128>}]} {
    %c0 = arith.constant 0 : index
    %c0_0 = arith.constant 0 : index
    %0 = vector.load %arg1[%c0, %c0_0] : memref<8x3200xbf16, #tpu.memory_space<vmem>>, vector<8x3200xbf16>
    %c0_1 = arith.constant 0 : index
    %c0_2 = arith.constant 0 : index
    %1 = vector.load %arg2[%c0_1, %c0_2] : memref<3200x128xbf16, #tpu.memory_space<vmem>>, vector<3200x128xbf16>
    %cst = arith.constant dense<0.000000e+00> : vector<8x128xf32>
    %2 = tpu.matmul %0, %1, %cst {dimension_numbers = #tpu.dot_dimension_numbers<[1], [0], [0], [1], [0, 0, 1, 1], [], []>} : vector<8x3200xbf16>, vector<3200x128xbf16>, vector<8x128xf32> -> vector<8x128xf32>
    %c0_3 = arith.constant 0 : index
    %c0_4 = arith.constant 0 : index
    %3 = vector.load %arg3[%c0_3, %c0_4] : memref<8x128xf32, #tpu.memory_space<vmem>>, vector<8x128xf32>
    tpu.vector_store %arg3[%c0_3, %c0_4], %2 {strides = array<i32>} : memref<8x128xf32, #tpu.memory_space<vmem>>, vector<8x128xf32>,
    return
  }
  func.func @transform_0(%arg0: i32) -> (i32, i32) {
    %c0_i32 = arith.constant 0 : i32
    %c0_i32_0 = arith.constant 0 : i32
    return %arg0, %c0_i32 : i32, i32
  }
  func.func @transform_1(%arg0: i32) -> (i32, i32) {
    %c0_i32 = arith.constant 0 : i32
    %c0_i32_0 = arith.constant 0 : i32
    %c0_i32_1 = arith.constant 0 : i32
    return %c0_i32, %c0_i32_0 : i32, i32
  }
  func.func @transform_2(%arg0: i32) -> (i32, i32) {
    %c0_i32 = arith.constant 0 : i32
    %c0_i32_0 = arith.constant 0 : i32
    return %arg0, %c0_i32 : i32, i32
  }
}

</mosaic_0001>

<bundles_post_ra>
// kernel: analysis_forward.3
= control target key start
LH: loop header
LB: loop body
LE: loop exit
PB: predicated region body
PF: predicated region fallthrough
CT: control target
= control target key end

     0   :  { %s1018_s18 = smov 0   ;;  %s1151_s0 = inlined_call_operand.vmem [shape: bf16[128,243], index: 0, kind: input, shape index: {}]   ;;  %s1152_s1 = inlined_call_operand.vmem [shape: bf16[243,128], index: 1, kind: input, shape index: {}]   ;;  %s1153_s2 = inlined_call_operand.vmem [shape: f32[1,128], index: 2, kind: input, shape index: {}]   ;;  %s1154_s3 = inlined_call_operand.vmem [shape: bf16[128,128], index: 3, kind: input, shape index: {}]   ;;  %s1155_s4 = inlined_call_operand.vmem [shape: f32[1,128], index: 4, kind: input, shape index: {}]   ;;  %s1156_s5 = inlined_call_operand.vmem [shape: bf16[128,128], index: 5, kind: output, shape index: {}]  }
   0x1 LB: > { %s752_s19 = sadd.s32 4294967295, %s985_s18   ;;  %p756_p0 = scmp.ge.s32.totalorder %s985_s18, 1  ;;  %s985_s18 = sphi %s1018_s18, %s15_s18  }
   0x2   : > { %p189_p1 = scmp.lt.s32.totalorder %s985_s18, 3 }
   0x4   : > { %p190_p2 = pnand %p756_p0, %p189_p1 }
   0x5   : > { %s757_s26 = sshll.u32 (!%p190_p2), %s752_s19, 3 }
   0x6   : > { %193 = sbr.rel (%p190_p2) target bundleno = 499 (0x1f3), region = 40  ;;  %p219_p3 = scmp.lt.s32.totalorder (!%p190_p2), %s757_s26, 15 }
   0xb   : > { %v927_v0 = vld [vmem:[%s1152_s1 + $0x78] ss:$0 sps:$4 sm:$0x33]   ;;  %vm420_vm0 = vcmask 1040384   ;;  %vm421_vm1 = vcmask 1041408   ;;  %v987_v1 = vmov 65535  }
   0xc   : > { %v422_v2 = vsel %vm420_vm0, 4294967295, %v987_v1  ;;  %v928_v4 = vld [vmem:[%s1152_s1 + $0x38] sm:$0xff]   ;;  %v929_v6 = vld [vmem:[%s1152_s1 + $0x70] sm:$0xff]   ;;  %s1158_s26 = smov (!%p219_p3, %s757_s26), 15  ;;  %v931_v8 = vld [vmem:[%s1152_s1 + $0x68] sm:$0xff]   ;;  %vm407_vm2 = vcmask 941056  }
   0xd   : > { %v423_v3 = vsel %vm421_vm1, %v422_v2, 0  ;;  %v930_v7 = vld [vmem:[%s1152_s1 + $0x30] sm:$0xff]   ;;  %v932_v9 = vld [vmem:[%s1152_s1 + $0x28] sm:$0xff]   ;;  %s810_s8 = sshll.u32 %s1158_s26, 3  ;;  %v933_v10 = vld [vmem:[%s1152_s1 + $0x60] sm:$0xff]   ;;  %s761_s6 = sshll.u32 %s1158_s26, 2 }
   0xe   : > { %v425_v5 = vand.u32 %v927_v0, %v423_v3  ;;  %s1053_s13 = scalar_lea.vmem %s1151_s0, %s810_s8  ;;  %v934_v11 = vld [vmem:[%s1152_s1 + $0x20] sm:$0xff]   ;;  %v935_v12 = vld [vmem:[%s1152_s1 + $0x58] sm:$0xff]   ;;  %v937_v15 = vld [vmem:[%s1152_s1 + $0x50] sm:$0xff]   ;;  %s229_s9 = scalar_lea.vmem %s1156_s5, %s761_s6 }
   0xf   : > { %v945_v13 = vld [vmem:[%s1053_s13 + $0x4] ss:$8 sps:$4 sm:$0xff]   ;;  %v936_v14 = vld [vmem:[%s1152_s1 + $0x18] sm:$0xff]   ;;  %v938_v16 = vld [vmem:[%s1152_s1 + $0x10] sm:$0xff]  }
  0x10   : > { %842 = vmatprep.subr.bf16.mxu0 %v425_v5  ;;  %787 = vmatprep.mubr.msk.bf16.mxu0 %vm407_vm2, %v945_v13  ;;  %v939_v17 = vld [vmem:[%s1152_s1 + $0x48] sm:$0xff]   ;;  %v955_v18 = vld [vmem:[%s1154_s3 + $0x38] sm:$0xff]   ;;  %v956_v19 = vld [vmem:[%s1154_s3 + $0x30] sm:$0xff]  }
  0x11   : > { %843 = vmatpush3.bf16.msra.mxu0 %v928_v4  ;;  %894 = vmatprep.subr.bf16.mxu1 %v955_v18  ;;  %v957_v20 = vld [vmem:[%s1154_s3 + $0x28] sm:$0xff]   ;;  %v941_v22 = vld [vmem:[%s1152_s1 + $0x40] sm:$0xff]   ;;  %v946_v25 = vld [vmem:[%s1053_s13 + $0x14] ss:$8 sps:$4 sm:$0xff]  }
  0x12   : > { %844 = vmatprep.subr.bf16.mxu0 %v929_v6  ;;  %v940_v21 = vld [vmem:[%s1152_s1 + $0x8] sm:$0xff]   ;;  %895 = vmatpush3.bf16.msra.mxu1 %v955_v18  ;;  %v942_v23 = vld [vmem:[%s1152_s1] sm:$0xff]   ;;  %v948_v26 = vld [vmem:[%s1053_s13 + $0x10] ss:$8 sps:$4 sm:$0xff]  }
  0x13   : > { %896 = vmatprep.subr.bf16.mxu1 %v956_v19  ;;  %v943_v24 = vld [vmem:[%s1053_s13] ss:$8 sps:$4 sm:$0xff]   ;;  %v949_v27 = vld [vmem:[%s1053_s13 + $0x24] ss:$8 sps:$4 sm:$0xff]   ;;  %v952_v29 = vld [vmem:[%s1053_s13 + $0x34] ss:$8 sps:$4 sm:$0xff]  }
  0x14   : > { %v951_v28 = vld [vmem:[%s1053_s13 + $0x20] ss:$8 sps:$4 sm:$0xff]   ;;  %v954_v30 = vld [vmem:[%s1053_s13 + $0x30] ss:$8 sps:$4 sm:$0xff]  }
  0x15   : > { %845 = vmatpush3.bf16.msra.mxu0 %v930_v7  ;;  %v958_v31 = vld [vmem:[%s1154_s3 + $0x20] sm:$0xff]   ;;  %v959_v32 = vld [vmem:[%s1154_s3 + $0x18] sm:$0xff]   ;;  %v960_v33 = vld [vmem:[%s1154_s3 + $0x10] sm:$0xff]  }
  0x16   : > { %846 = vmatprep.subr.bf16.mxu0 %v931_v8  ;;  %897 = vmatpush3.bf16.msra.mxu1 %v956_v19  ;;  %v961_v34 = vld [vmem:[%s1154_s3 + $0x8] sm:$0xff]   ;;  %v962_v35 = vld [vmem:[%s1154_s3] sm:$0xff]  }
  0x17   : > { %898 = vmatprep.subr.bf16.mxu1 %v957_v20  ;;  %v762_v39 = vld [vmem:[%s1153_s2] ss:$0 sm:$0xff] }
  0x19   : > { %847 = vmatpush3.bf16.msra.mxu0 %v932_v9 }
  0x1a   : > { %848 = vmatprep.subr.bf16.mxu0 %v933_v10  ;;  %899 = vmatpush3.bf16.msra.mxu1 %v957_v20 }
  0x1b   : > { %900 = vmatprep.subr.bf16.mxu1 %v958_v31 }
  0x1d   : > { %849 = vmatpush3.bf16.msra.mxu0 %v934_v11 }
  0x1e   : > { %850 = vmatprep.subr.bf16.mxu0 %v935_v12  ;;  %901 = vmatpush3.bf16.msra.mxu1 %v958_v31 }
  0x1f   : > { %902 = vmatprep.subr.bf16.mxu1 %v959_v32 }
  0x21   : > { %851 = vmatpush3.bf16.msra.mxu0 %v936_v14 }
  0x22   : > { %852 = vmatprep.subr.bf16.mxu0 %v937_v15  ;;  %903 = vmatpush3.bf16.msra.mxu1 %v959_v32 }
  0x23   : > { %904 = vmatprep.subr.bf16.mxu1 %v960_v33 }
  0x25   : > { %853 = vmatpush3.bf16.msra.mxu0 %v938_v16 }
  0x26   : > { %854 = vmatprep.subr.bf16.mxu0 %v939_v17  ;;  %905 = vmatpush3.bf16.msra.mxu1 %v960_v33  ;;  %v791_v17 = vld [vmem:[%s1155_s4] ss:$0 sm:$0xff] }
  0x27   : > { %906 = vmatprep.subr.bf16.mxu1 %v961_v34 }
  0x29   : > { %855 = vmatpush3.bf16.msra.mxu0 %v940_v21 }
  0x2a   : > { %856 = vmatprep.subr.bf16.mxu0 %v941_v22  ;;  %907 = vmatpush3.bf16.msra.mxu1 %v961_v34 }
  0x2b   : > { %908 = vmatprep.subr.bf16.mxu1 %v962_v35 }
  0x2d   : > { %857 = vmatpush3.bf16.msra.mxu0 %v942_v23 }
  0x2e   : > { %909 = vmatpush3.bf16.msra.mxu1 %v962_v35 }
  0x30   : > { %460 = vmatmul.mubr.bf16.vlgmr.msra.gmra.mxu0 %v943_v24 }
  0x31   : > { %788 = vmatprep.mubr.msk.bf16.mxu0 %vm407_vm2, %v946_v25 }
  0x38   : > { %468 = vmatmul.mubr.bf16.gmra.mxu0 %v948_v26 }
  0x39   : > { %789 = vmatprep.mubr.msk.bf16.mxu0 %vm407_vm2, %v949_v27 }
  0x40   : > { %476 = vmatmul.mubr.bf16.gmra.mxu0 %v951_v28 }
  0x41   : > { %790 = vmatprep.mubr.msk.bf16.mxu0 %vm407_vm2, %v952_v29 }
  0x48   : > { %484 = vmatmul.mubr.bf16.gmra.mxu0 %v954_v30 }
  0xf0   : > { %v858_v36 = vpop.f32.mrf.mxu0 }
  0xf2   : > { %v859_v37 = vpop.f32.mrf.mxu0 }
  0xf3   : > { %v860_v38 = vadd.f32 %v859_v37, %v858_v36 }
  0xf4   : > { %v861_v40 = vpop.f32.mrf.mxu0 }
  0xf5   : > { %v1121_v42 = vadd.f32 %v860_v38, %v762_v39 }
  0xf6   : > { %v862_v41 = vpop.f32.mrf.mxu0 }
  0xf7   : > { %v863_v43 = vadd.f32 %v862_v41, %v861_v40  ;;  %v492_v48 = vmul.f32 %v1121_v42, %v1121_v42 }
  0xf8   : > { %v864_v44 = vpop.f32.mrf.mxu0 }
  0xf9   : > { %v1123_v45 = vadd.f32 %v863_v43, %v762_v39 }
  0xfa   : > { %v865_v46 = vpop.f32.mrf.mxu0 }
  0xfb   : > { %v866_v47 = vadd.f32 %v865_v46, %v864_v44  ;;  %v493_v49 = vmul.f32 %v1123_v45, %v1123_v45 }
  0xfc   : > { %v867_v50 = vpop.f32.mrf.mxu0 }
  0xfd   : > { %v500_v51 = vpack.c.bf16 %v493_v49, %v492_v48  ;;  %v470_v53 = vadd.f32 %v866_v47, %v762_v39 }
  0xfe   : > { %v868_v52 = vpop.f32.mrf.mxu0 }
  0xff   : > { %v869_v54 = vadd.f32 %v868_v52, %v867_v50  ;;  %910 = vmatprep.mubr.bf16.mxu1 %v500_v51  ;;  %v494_v58 = vmul.f32 %v470_v53, %v470_v53 }
 0x100   : > { %v870_v55 = vpop.f32.mrf.mxu0 }
 0x101   : > { %v473_v56 = vadd.f32 %v869_v54, %v762_v39 }
 0x102   : > { %v871_v57 = vpop.f32.mrf.mxu0 }
 0x103   : > { %v495_v59 = vmul.f32 %v473_v56, %v473_v56  ;;  %v872_v60 = vadd.f32 %v871_v57, %v870_v55 }
 0x104   : > { %v873_v61 = vpop.f32.mrf.mxu0 }
 0x105   : > { %v501_v62 = vpack.c.bf16 %v495_v59, %v494_v58  ;;  %v1129_v0 = vadd.f32 %v872_v60, %v762_v39 }
 0x106   : > { %v874_v63 = vpop.f32.mrf.mxu0 }
 0x107   : > { %v875_v1 = vadd.f32 %v874_v63, %v873_v61  ;;  %911 = vmatmul.mubr.bf16.vlgmr.msra.gmra.mxu1 %v501_v62  ;;  %v496_v5 = vmul.f32 %v1129_v0, %v1129_v0 }
 0x108   : > { %v876_v2 = vpop.f32.mrf.mxu0 }
 0x109   : > { %v1131_v3 = vadd.f32 %v875_v1, %v762_v39 }
 0x10a   : > { %v877_v4 = vpop.f32.mrf.mxu0 }
 0x10b   : > { %v497_v6 = vmul.f32 %v1131_v3, %v1131_v3  ;;  %v878_v7 = vadd.f32 %v877_v4, %v876_v2 }
 0x10c   : > { %v879_v8 = vpop.f32.mrf.mxu0 }
 0x10d   : > { %v502_v9 = vpack.c.bf16 %v497_v6, %v496_v5  ;;  %v486_v11 = vadd.f32 %v878_v7, %v762_v39 }
 0x10e   : > { %v880_v10 = vpop.f32.mrf.mxu0 }
 0x10f   : > { %v881_v12 = vadd.f32 %v880_v10, %v879_v8  ;;  %914 = vmatprep.mubr.bf16.mxu1 %v502_v9  ;;  %v498_v14 = vmul.f32 %v486_v11, %v486_v11 }
 0x111   : > { %v489_v13 = vadd.f32 %v881_v12, %v762_v39 }
 0x113   : > { %v499_v15 = vmul.f32 %v489_v13, %v489_v13 }
 0x115   : > { %v503_v16 = vpack.c.bf16 %v499_v15, %v498_v14 }
 0x117   : > { %915 = vmatmul.mubr.bf16.gmra.mxu1 %v503_v16 }
 0x1c7   : > { %v912_v18 = vpop.f32.mrf.mxu1 }
 0x1c8   : > { %v618_v19 = vadd.f32 %v912_v18, %v791_v17 }
 0x1c9   : > { %v609_v20 = vpop.f32.mrf.mxu1 }
 0x1ca   : > { %v610_v21 = vadd.f32 %v791_v17, %v609_v20  ;;  %963 = vrsqrt.f32 %v618_v19 }
 0x1cb   : > { %v913_v22 = vpop.f32.mrf.mxu1 }
 0x1cc   : > { %v621_v23 = vadd.f32 %v913_v22, %v791_v17  ;;  %965 = vrsqrt.f32 %v610_v21 }
 0x1cd   : > { %v612_v24 = vpop.f32.mrf.mxu1 }
 0x1ce   : > { %967 = vrsqrt.f32 %v621_v23  ;;  %v613_v25 = vadd.f32 %v791_v17, %v612_v24 }
 0x1d0   : > { %969 = vrsqrt.f32 %v613_v25 }
 0x1d7   : > { %v916_v26 = vpop.f32.mrf.mxu1  ;;  %v964_v28 = vpop.eup %963 }
 0x1d8   : > { %v634_v27 = vadd.f32 %v916_v26, %v791_v17  ;;  %v650_v34 = vmul.f32 %v964_v28, %v470_v53 }
 0x1d9   : > { %v625_v29 = vpop.f32.mrf.mxu1  ;;  %v966_v30 = vpop.eup %965 }
 0x1da   : > { %v626_v31 = vadd.f32 %v791_v17, %v625_v29  ;;  %971 = vrsqrt.f32 %v634_v27  ;;  %v648_v38 = vmul.f32 %v966_v30, %v1121_v42 }
 0x1db   : > { %v968_v32 = vpop.eup %967  ;;  %v917_v33 = vpop.f32.mrf.mxu1 }
 0x1dc   : > { %v651_v35 = vmul.f32 %v968_v32, %v473_v56  ;;  %v637_v36 = vadd.f32 %v917_v33, %v791_v17  ;;  %973 = vrsqrt.f32 %v626_v31 }
 0x1dd   : > { %v970_v37 = vpop.eup %969  ;;  %v628_v39 = vpop.f32.mrf.mxu1 }
 0x1de   : > { %v827_v40 = vpack.c.bf16 %v651_v35, %v650_v34  ;;  %v649_v41 = vmul.f32 %v970_v37, %v1123_v45  ;;  %975 = vrsqrt.f32 %v637_v36  ;;  %v629_v43 = vadd.f32 %v791_v17, %v628_v39 }
 0x1e0   : > { %839 = vst [vmem:[%s229_s9 + $0x8] sm:$0xff] %v827_v40   ;;  %v822_v44 = vpack.c.bf16 %v649_v41, %v648_v38  ;;  %977 = vrsqrt.f32 %v629_v43 }
 0x1e2   : > { %823 = vst [vmem:[%s229_s9] sm:$0xff] %v822_v44  }
 0x1e7   : > { %v972_v46 = vpop.eup %971 }
 0x1e8   : > { %v654_v49 = vmul.f32 %v972_v46, %v486_v11 }
 0x1e9   : > { %v974_v47 = vpop.eup %973 }
 0x1ea   : > { %v652_v51 = vmul.f32 %v974_v47, %v1129_v0 }
 0x1eb   : > { %v976_v48 = vpop.eup %975 }
 0x1ec   : > { %v655_v42 = vmul.f32 %v976_v48, %v489_v13 }
 0x1ed   : > { %v978_v50 = vpop.eup %977 }
 0x1ee   : > { %v837_v52 = vpack.c.bf16 %v655_v42, %v654_v49  ;;  %v653_v53 = vmul.f32 %v978_v50, %v1131_v3 }
 0x1f0   : > { %841 = vst [vmem:[%s229_s9 + $0x18] sm:$0xff] %v837_v52   ;;  %v832_v54 = vpack.c.bf16 %v653_v53, %v652_v51 }
 0x1f2   : > { %840 = vst [vmem:[%s229_s9 + $0x10] sm:$0xff] %v832_v54  }
 0x1f3 PF: > { %s15_s18 = sadd.s32 1, %s985_s18  }
 0x1f4   : > { %p12_p4 = scmp.ge.s32.totalorder %s15_s18, 4  }
 0x1f6   :  { %14 = sbr.rel (!%p12_p4) target bundleno = 1 (0x1), region = 70 }

// kernel: analysis_forward.4
= control target key start
LH: loop header
LB: loop body
LE: loop exit
PB: predicated region body
PF: predicated region fallthrough
CT: control target
= control target key end

     0   :  { %s3586_s18 = smov 0   ;;  %s4266_s0 = inlined_call_operand.vmem [shape: bf16[32,3200], index: 0, kind: input, shape index: {}]   ;;  %s4267_s1 = inlined_call_operand.vmem [shape: bf16[3200,128], index: 1, kind: input, shape index: {}]   ;;  %s4268_s2 = inlined_call_operand.vmem [shape: f32[1,128], index: 2, kind: input, shape index: {}]   ;;  %s4269_s3 = inlined_call_operand.vmem [shape: bf16[128,128], index: 3, kind: input, shape index: {}]   ;;  %s4270_s4 = inlined_call_operand.vmem [shape: f32[1,128], index: 4, kind: input, shape index: {}]   ;;  %s4271_s5 = inlined_call_operand.vmem [shape: bf16[32,128], index: 5, kind: output, shape index: {}]  }
   0x1 LB: > { %s2709_s19 = sadd.s32 4294967295, %s3552_s18   ;;  %p2713_p0 = scmp.ge.s32.totalorder %s3552_s18, 1  ;;  %s3552_s18 = sphi %s3586_s18, %s15_s18  }
   0x2   : > { %p189_p1 = scmp.lt.s32.totalorder %s3552_s18, 3 }
   0x4   : > { %p190_p2 = pnand %p2713_p0, %p189_p1 }
   0x5   : > { %s2714_s25 = sshll.u32 (!%p190_p2), %s2709_s19, 1 }
   0x6   : > { %193 = sbr.rel (%p190_p2) target bundleno = 657 (0x291), region = 40  ;;  %p219_p3 = scmp.lt.s32.totalorder (!%p190_p2), %s2714_s25, 3 }
   0xb   : > { %v3297_v0 = vld [vmem:[%s4267_s1 + $0x78] sm:$0xff]   ;;  %v3301_v4 = vld [vmem:[%s4267_s1 + $0x70] sm:$0xff]   ;;  %v3305_v8 = vld [vmem:[%s4267_s1 + $0x68] sm:$0xff]   ;;  %s4273_s25 = smov (!%p219_p3, %s2714_s25), 3  ;;  %vm3555_vm0 = vmmov 0  }
   0xc   : > { %v3298_v1 = vld [vmem:[%s4267_s1 + $0x38] sm:$0xff]   ;;  %2964 = vmatprep.subr.bf16.mxu0 %v3297_v0  ;;  %v3302_v5 = vld [vmem:[%s4267_s1 + $0x30] sm:$0xff]   ;;  %v3306_v9 = vld [vmem:[%s4267_s1 + $0x28] sm:$0xff]   ;;  %s3286_s24 = smul.u32 100, %s4273_s25  ;;  %s2717_s22 = sshll.u32 %s4273_s25, 2 }
   0xd   : > { %v3299_v2 = vld [vmem:[%s4267_s1 + $0xf8] sm:$0xff]   ;;  %2965 = vmatpush3.bf16.msra.mxu0 %v3298_v1  ;;  %v3303_v6 = vld [vmem:[%s4267_s1 + $0xf0] sm:$0xff]   ;;  %v3307_v10 = vld [vmem:[%s4267_s1 + $0xe8] sm:$0xff]   ;;  %s229_s26 = scalar_lea.vmem %s4271_s5, %s2717_s22 }
   0xe   : > { %v3300_v3 = vld [vmem:[%s4267_s1 + $0xb8] sm:$0xff]   ;;  %2986 = vmatprep.subr.bf16.mxu1 %v3299_v2  ;;  %2966 = vmatprep.subr.bf16.mxu0 %v3301_v4  ;;  %v3304_v7 = vld [vmem:[%s4267_s1 + $0xb0] sm:$0xff]   ;;  %v3308_v11 = vld [vmem:[%s4267_s1 + $0xa8] sm:$0xff]   ;;  %s3689_s10 = scalar_lea.vmem %s4266_s0, %s3286_s24 }
   0xf   : > { %2987 = vmatpush3.bf16.msra.mxu1 %v3300_v3  ;;  %v3309_v12 = vld [vmem:[%s4267_s1 + $0x60] sm:$0xff]   ;;  %v3313_v16 = vld [vmem:[%s4267_s1 + $0x58] sm:$0xff]   ;;  %v3317_v20 = vld [vmem:[%s4267_s1 + $0x50] sm:$0xff]  }
  0x10   : > { %2988 = vmatprep.subr.bf16.mxu1 %v3303_v6  ;;  %v3310_v13 = vld [vmem:[%s4267_s1 + $0x20] sm:$0xff]   ;;  %v3314_v17 = vld [vmem:[%s4267_s1 + $0x18] sm:$0xff]   ;;  %v3318_v21 = vld [vmem:[%s4267_s1 + $0x10] sm:$0xff]  }
  0x11   : > { %2967 = vmatpush3.bf16.msra.mxu0 %v3302_v5  ;;  %v3311_v14 = vld [vmem:[%s4267_s1 + $0xe0] sm:$0xff]   ;;  %v3315_v18 = vld [vmem:[%s4267_s1 + $0xd8] sm:$0xff]   ;;  %v3319_v22 = vld [vmem:[%s4267_s1 + $0xd0] sm:$0xff]  }
  0x12   : > { %2968 = vmatprep.subr.bf16.mxu0 %v3305_v8  ;;  %v3312_v15 = vld [vmem:[%s4267_s1 + $0xa0] sm:$0xff]   ;;  %v3316_v19 = vld [vmem:[%s4267_s1 + $0x98] sm:$0xff]   ;;  %v3320_v23 = vld [vmem:[%s4267_s1 + $0x90] sm:$0xff]  }
  0x13   : > { %2989 = vmatpush3.bf16.msra.mxu1 %v3304_v7  ;;  %v3321_v24 = vld [vmem:[%s4267_s1 + $0x48] sm:$0xff]   ;;  %v3325_v28 = vld [vmem:[%s4267_s1 + $0x40] sm:$0xff]   ;;  %v3332_v34 = vld [vmem:[%s4267_s1 + $0x178] sm:$0xff]  }
  0x14   : > { %2990 = vmatprep.subr.bf16.mxu1 %v3307_v10  ;;  %v3322_v25 = vld [vmem:[%s4267_s1 + $0x8] sm:$0xff]   ;;  %v3326_v29 = vld [vmem:[%s4267_s1] sm:$0xff]   ;;  %v3336_v37 = vld [vmem:[%s4267_s1 + $0x138] sm:$0xff]  }
  0x15   : > { %2969 = vmatpush3.bf16.msra.mxu0 %v3306_v9  ;;  %v3323_v26 = vld [vmem:[%s4267_s1 + $0xc8] sm:$0xff]   ;;  %v3327_v30 = vld [vmem:[%s4267_s1 + $0xc0] sm:$0xff]   ;;  %v3337_v38 = vld [vmem:[%s4267_s1 + $0x1f8] sm:$0xff]  }
  0x16   : > { %2970 = vmatprep.subr.bf16.mxu0 %v3309_v12  ;;  %v3324_v27 = vld [vmem:[%s4267_s1 + $0x88] sm:$0xff]   ;;  %v3328_v31 = vld [vmem:[%s3689_s10] ss:$100 sps:$4 sm:$0xff]   ;;  %v3338_v39 = vld [vmem:[%s4267_s1 + $0x1b8] sm:$0xff]  }
  0x17   : > { %2991 = vmatpush3.bf16.msra.mxu1 %v3308_v11  ;;  %v3330_v32 = vld [vmem:[%s3689_s10 + $0x4] ss:$100 sps:$4 sm:$0xff]   ;;  %v3335_v36 = vld [vmem:[%s3689_s10 + $0xc] ss:$100 sps:$4 sm:$0xff]   ;;  %v3351_v52 = vld [vmem:[%s4267_s1 + $0x158] sm:$0xff]  }
  0x18   : > { %2992 = vmatprep.subr.bf16.mxu1 %v3311_v14  ;;  %v3331_v33 = vld [vmem:[%s4267_s1 + $0x80] sm:$0xff]   ;;  %2023 = vmatprep.mubr.bf16.mxu0 %v3330_v32  ;;  %v3333_v35 = vld [vmem:[%s3689_s10 + $0x8] ss:$100 sps:$4 sm:$0xff]   ;;  %v3339_v40 = vld [vmem:[%s4267_s1 + $0x170] sm:$0xff]  }
  0x19   : > { %2971 = vmatpush3.bf16.msra.mxu0 %v3310_v13  ;;  %2064 = vmatprep.mubr.bf16.mxu1 %v3335_v36  ;;  %v3340_v41 = vld [vmem:[%s4267_s1 + $0x130] sm:$0xff]   ;;  %v3343_v44 = vld [vmem:[%s4267_s1 + $0x168] sm:$0xff]   ;;  %v3347_v48 = vld [vmem:[%s4267_s1 + $0x160] sm:$0xff]  }
  0x1a   : > { %2972 = vmatprep.subr.bf16.mxu0 %v3313_v16  ;;  %v3341_v42 = vld [vmem:[%s4267_s1 + $0x1f0] sm:$0xff]   ;;  %v3344_v45 = vld [vmem:[%s4267_s1 + $0x128] sm:$0xff]   ;;  %v3348_v49 = vld [vmem:[%s4267_s1 + $0x120] sm:$0xff]  }
  0x1b   : > { %2993 = vmatpush3.bf16.msra.mxu1 %v3312_v15  ;;  %v3342_v43 = vld [vmem:[%s4267_s1 + $0x1b0] sm:$0xff]   ;;  %v3345_v46 = vld [vmem:[%s4267_s1 + $0x1e8] sm:$0xff]   ;;  %v3349_v50 = vld [vmem:[%s4267_s1 + $0x1e0] sm:$0xff]  }
  0x1c   : > { %2994 = vmatprep.subr.bf16.mxu1 %v3315_v18  ;;  %v3346_v47 = vld [vmem:[%s4267_s1 + $0x1a8] sm:$0xff]   ;;  %v3350_v51 = vld [vmem:[%s4267_s1 + $0x1a0] sm:$0xff]   ;;  %v3352_v53 = vld [vmem:[%s4267_s1 + $0x118] sm:$0xff]  }
  0x1d   : > { %2973 = vmatpush3.bf16.msra.mxu0 %v3314_v17  ;;  %v3353_v54 = vld [vmem:[%s4267_s1 + $0x1d8] sm:$0xff]   ;;  %v3355_v56 = vld [vmem:[%s4267_s1 + $0x150] sm:$0xff]   ;;  %v3359_v60 = vld [vmem:[%s4267_s1 + $0x148] sm:$0xff]  }
  0x1e   : > { %2974 = vmatprep.subr.bf16.mxu0 %v3317_v20  ;;  %v3354_v55 = vld [vmem:[%s4267_s1 + $0x198] sm:$0xff]   ;;  %v3356_v57 = vld [vmem:[%s4267_s1 + $0x110] sm:$0xff]   ;;  %v3360_v61 = vld [vmem:[%s4267_s1 + $0x108] sm:$0xff]  }
  0x1f   : > { %2995 = vmatpush3.bf16.msra.mxu1 %v3316_v19  ;;  %v3357_v58 = vld [vmem:[%s4267_s1 + $0x1d0] sm:$0xff]   ;;  %v3361_v62 = vld [vmem:[%s4267_s1 + $0x1c8] sm:$0xff]   ;;  %v3363_v0 = vld [vmem:[%s4267_s1 + $0x140] sm:$0xff]  }
  0x20   : > { %2996 = vmatprep.subr.bf16.mxu1 %v3319_v22  ;;  %v3358_v59 = vld [vmem:[%s4267_s1 + $0x190] sm:$0xff]   ;;  %v3362_v63 = vld [vmem:[%s4267_s1 + $0x188] sm:$0xff]   ;;  %v3364_v1 = vld [vmem:[%s4267_s1 + $0x100] sm:$0xff]  }
  0x21   : > { %2975 = vmatpush3.bf16.msra.mxu0 %v3318_v21  ;;  %v3365_v2 = vld [vmem:[%s4267_s1 + $0x1c0] sm:$0xff]   ;;  %v3366_v3 = vld [vmem:[%s3689_s10 + $0x10] ss:$100 sps:$4 sm:$0xff]   ;;  %v3370_v6 = vld [vmem:[%s4267_s1 + $0x278] sm:$0xff]  }
  0x22   : > { %2976 = vmatprep.subr.bf16.mxu0 %v3321_v24  ;;  %v3368_v4 = vld [vmem:[%s3689_s10 + $0x14] ss:$100 sps:$4 sm:$0xff]   ;;  %v3369_v5 = vld [vmem:[%s4267_s1 + $0x180] sm:$0xff]   ;;  %v3381_v16 = vld [vmem:[%s4267_s1 + $0x268] sm:$0xff]  }
  0x23   : > { %2997 = vmatpush3.bf16.msra.mxu1 %v3320_v23  ;;  %v3371_v7 = vld [vmem:[%s3689_s10 + $0x18] ss:$100 sps:$4 sm:$0xff]   ;;  %v3377_v12 = vld [vmem:[%s4267_s1 + $0x270] sm:$0xff]   ;;  %v3382_v17 = vld [vmem:[%s4267_s1 + $0x228] sm:$0xff]  }
  0x24   : > { %2998 = vmatprep.subr.bf16.mxu1 %v3323_v26  ;;  %v3373_v8 = vld [vmem:[%s3689_s10 + $0x1c] ss:$100 sps:$4 sm:$0xff]   ;;  %v3378_v13 = vld [vmem:[%s4267_s1 + $0x230] sm:$0xff]   ;;  %v3383_v18 = vld [vmem:[%s4267_s1 + $0x2e8] sm:$0xff]  }
  0x25   : > { %2977 = vmatpush3.bf16.msra.mxu0 %v3322_v25  ;;  %v3374_v9 = vld [vmem:[%s4267_s1 + $0x238] sm:$0xff]   ;;  %v3379_v14 = vld [vmem:[%s4267_s1 + $0x2f0] sm:$0xff]   ;;  %v3384_v19 = vld [vmem:[%s4267_s1 + $0x2a8] sm:$0xff]  }
  0x26   : > { %2978 = vmatprep.subr.bf16.mxu0 %v3325_v28  ;;  %v3375_v10 = vld [vmem:[%s4267_s1 + $0x2f8] sm:$0xff]   ;;  %v3380_v15 = vld [vmem:[%s4267_s1 + $0x2b0] sm:$0xff]   ;;  %v3385_v20 = vld [vmem:[%s4267_s1 + $0x260] sm:$0xff]  }
  0x27   : > { %2999 = vmatpush3.bf16.msra.mxu1 %v3324_v27  ;;  %v3376_v11 = vld [vmem:[%s4267_s1 + $0x2b8] sm:$0xff]   ;;  %v3386_v21 = vld [vmem:[%s4267_s1 + $0x220] sm:$0xff]   ;;  %v3393_v28 = vld [vmem:[%s4267_s1 + $0x250] sm:$0xff]  }
  0x28   : > { %3000 = vmatprep.subr.bf16.mxu1 %v3327_v30  ;;  %v3387_v22 = vld [vmem:[%s4267_s1 + $0x2e0] sm:$0xff]   ;;  %v3389_v24 = vld [vmem:[%s4267_s1 + $0x258] sm:$0xff]   ;;  %v3395_v30 = vld [vmem:[%s4267_s1 + $0x2d0] sm:$0xff]  }
  0x29   : > { %2979 = vmatpush3.bf16.msra.mxu0 %v3326_v29  ;;  %v3388_v23 = vld [vmem:[%s4267_s1 + $0x2a0] sm:$0xff]   ;;  %v3390_v25 = vld [vmem:[%s4267_s1 + $0x218] sm:$0xff]   ;;  %v3394_v29 = vld [vmem:[%s4267_s1 + $0x210] sm:$0xff]  }
  0x2a   : > { %3008 = vmatprep.subr.bf16.mxu0 %v3332_v34  ;;  %v3391_v26 = vld [vmem:[%s4267_s1 + $0x2d8] sm:$0xff]   ;;  %v3397_v32 = vld [vmem:[%s4267_s1 + $0x248] sm:$0xff]   ;;  %v3401_v36 = vld [vmem:[%s4267_s1 + $0x240] sm:$0xff]  }
  0x2b   : > { %3001 = vmatpush3.bf16.msra.mxu1 %v3331_v33  ;;  %v3392_v27 = vld [vmem:[%s4267_s1 + $0x298] sm:$0xff]   ;;  %v3398_v33 = vld [vmem:[%s4267_s1 + $0x208] sm:$0xff]  }
  0x2c   : > { %2024 = vmatmul.mubr.bf16.vlgmr.msra.gmra.mxu0 %v3328_v31  ;;  %3030 = vmatprep.subr.bf16.mxu1 %v3337_v38  ;;  %v3396_v31 = vld [vmem:[%s4267_s1 + $0x290] sm:$0xff]   ;;  %v3399_v34 = vld [vmem:[%s4267_s1 + $0x2c8] sm:$0xff]   ;;  %v3403_v38 = vld [vmem:[%s4267_s1 + $0x2c0] sm:$0xff]  }
  0x2d   : > { %3009 = vmatpush3.bf16.msra.mxu0 %v3336_v37  ;;  %2105 = vmatprep.mubr.bf16.mxu0 %v3368_v4  ;;  %v3402_v37 = vld [vmem:[%s4267_s1 + $0x200] sm:$0xff]   ;;  %v3435_v4 = vld [vmem:[%s4267_s1 + $0x348] sm:$0xff]  }
  0x2e   : > { %2065 = vmatmul.mubr.bf16.vlgmr.msra.gmra.mxu1 %v3333_v35  ;;  %3010 = vmatprep.subr.bf16.mxu0 %v3339_v40  ;;  %v3400_v35 = vld [vmem:[%s4267_s1 + $0x288] sm:$0xff]  }
  0x2f   : > { %3031 = vmatpush3.bf16.msra.mxu1 %v3338_v39  ;;  %2146 = vmatprep.mubr.bf16.mxu1 %v3373_v8  ;;  %v3404_v39 = vld [vmem:[%s3689_s10 + $0x20] ss:$100 sps:$4 sm:$0xff]  }
  0x30   : > { %3032 = vmatprep.subr.bf16.mxu1 %v3341_v42  ;;  %v3406_v40 = vld [vmem:[%s3689_s10 + $0x24] ss:$100 sps:$4 sm:$0xff]   ;;  %v3408_v42 = vld [vmem:[%s4267_s1 + $0x378] sm:$0xff]  }
  0x31   : > { %3011 = vmatpush3.bf16.msra.mxu0 %v3340_v41  ;;  %v3407_v41 = vld [vmem:[%s4267_s1 + $0x280] sm:$0xff]  }
  0x32   : > { %3012 = vmatprep.subr.bf16.mxu0 %v3343_v44  ;;  %v3411_v44 = vld [vmem:[%s3689_s10 + $0x2c] ss:$100 sps:$4 sm:$0xff]   ;;  %v3439_v8 = vld [vmem:[%s4267_s1 + $0x340] sm:$0xff]  }
  0x33   : > { %3033 = vmatpush3.bf16.msra.mxu1 %v3342_v43  ;;  %v3409_v43 = vld [vmem:[%s3689_s10 + $0x28] ss:$100 sps:$4 sm:$0xff]  }
  0x34   : > { %3034 = vmatprep.subr.bf16.mxu1 %v3345_v46  ;;  %v3413_v46 = vld [vmem:[%s4267_s1 + $0x3f8] sm:$0xff]  }
  0x35   : > { %3013 = vmatpush3.bf16.msra.mxu0 %v3344_v45  ;;  %v3412_v45 = vld [vmem:[%s4267_s1 + $0x338] sm:$0xff]  }
  0x36   : > { %3014 = vmatprep.subr.bf16.mxu0 %v3347_v48  ;;  %v3415_v48 = vld [vmem:[%s4267_s1 + $0x370] sm:$0xff]  }
  0x37   : > { %3035 = vmatpush3.bf16.msra.mxu1 %v3346_v47  ;;  %v3414_v47 = vld [vmem:[%s4267_s1 + $0x3b8] sm:$0xff]  }
  0x38   : > { %3036 = vmatprep.subr.bf16.mxu1 %v3349_v50  ;;  %v3417_v50 = vld [vmem:[%s4267_s1 + $0x3f0] sm:$0xff]  }
  0x39   : > { %3015 = vmatpush3.bf16.msra.mxu0 %v3348_v49  ;;  %v3416_v49 = vld [vmem:[%s4267_s1 + $0x330] sm:$0xff]  }
  0x3a   : > { %3016 = vmatprep.subr.bf16.mxu0 %v3351_v52  ;;  %v3419_v52 = vld [vmem:[%s4267_s1 + $0x368] sm:$0xff]  }
  0x3b   : > { %3037 = vmatpush3.bf16.msra.mxu1 %v3350_v51  ;;  %v3418_v51 = vld [vmem:[%s4267_s1 + $0x3b0] sm:$0xff]  }
  0x3c   : > { %3038 = vmatprep.subr.bf16.mxu1 %v3353_v54  ;;  %v3421_v54 = vld [vmem:[%s4267_s1 + $0x3e8] sm:$0xff]  }
  0x3d   : > { %3017 = vmatpush3.bf16.msra.mxu0 %v3352_v53  ;;  %v3420_v53 = vld [vmem:[%s4267_s1 + $0x328] sm:$0xff]  }
  0x3e   : > { %3018 = vmatprep.subr.bf16.mxu0 %v3355_v56  ;;  %v3423_v56 = vld [vmem:[%s4267_s1 + $0x360] sm:$0xff]  }
  0x3f   : > { %3039 = vmatpush3.bf16.msra.mxu1 %v3354_v55  ;;  %v3422_v55 = vld [vmem:[%s4267_s1 + $0x3a8] sm:$0xff]  }
  0x40   : > { %3040 = vmatprep.subr.bf16.mxu1 %v3357_v58  ;;  %v3425_v58 = vld [vmem:[%s4267_s1 + $0x3e0] sm:$0xff]  }
  0x41   : > { %3019 = vmatpush3.bf16.msra.mxu0 %v3356_v57  ;;  %v3424_v57 = vld [vmem:[%s4267_s1 + $0x320] sm:$0xff]  }
  0x42   : > { %3020 = vmatprep.subr.bf16.mxu0 %v3359_v60  ;;  %v3427_v60 = vld [vmem:[%s4267_s1 + $0x358] sm:$0xff]  }
  0x43   : > { %3041 = vmatpush3.bf16.msra.mxu1 %v3358_v59  ;;  %v3426_v59 = vld [vmem:[%s4267_s1 + $0x3a0] sm:$0xff]  }
  0x44   : > { %3042 = vmatprep.subr.bf16.mxu1 %v3361_v62  ;;  %v3429_v62 = vld [vmem:[%s4267_s1 + $0x3d8] sm:$0xff]  }
  0x45   : > { %3021 = vmatpush3.bf16.msra.mxu0 %v3360_v61  ;;  %v3428_v61 = vld [vmem:[%s4267_s1 + $0x318] sm:$0xff]  }
  0x46   : > { %3022 = vmatprep.subr.bf16.mxu0 %v3363_v0  ;;  %v3431_v0 = vld [vmem:[%s4267_s1 + $0x350] sm:$0xff]  }
  0x47   : > { %3043 = vmatpush3.bf16.msra.mxu1 %v3362_v63  ;;  %v3430_v63 = vld [vmem:[%s4267_s1 + $0x398] sm:$0xff]  }
  0x48   : > { %3044 = vmatprep.subr.bf16.mxu1 %v3365_v2  ;;  %v3433_v2 = vld [vmem:[%s4267_s1 + $0x3d0] sm:$0xff]  }
  0x49   : > { %3023 = vmatpush3.bf16.msra.mxu0 %v3364_v1  ;;  %v3432_v1 = vld [vmem:[%s4267_s1 + $0x310] sm:$0xff]  }
  0x4a   : > { %3052 = vmatprep.subr.bf16.mxu0 %v3370_v6  ;;  %v3437_v6 = vld [vmem:[%s4267_s1 + $0x3c8] sm:$0xff]  }
  0x4b   : > { %3045 = vmatpush3.bf16.msra.mxu1 %v3369_v5  ;;  %v3436_v5 = vld [vmem:[%s4267_s1 + $0x308] sm:$0xff]  }
  0x4c   : > { %2106 = vmatmul.mubr.bf16.vlgmr.msra.gmra.mxu0 %v3366_v3  ;;  %3074 = vmatprep.subr.bf16.mxu1 %v3375_v10  ;;  %v3434_v3 = vld [vmem:[%s4267_s1 + $0x390] sm:$0xff]   ;;  %v3441_v10 = vld [vmem:[%s4267_s1 + $0x3c0] sm:$0xff]  }
  0x4d   : > { %3053 = vmatpush3.bf16.msra.mxu0 %v3374_v9  ;;  %2187 = vmatprep.mubr.bf16.mxu0 %v3406_v40  ;;  %v3440_v9 = vld [vmem:[%s4267_s1 + $0x300] sm:$0xff]   ;;  %v3473_v40 = vld [vmem:[%s4267_s1 + $0x448] sm:$0xff]  }
  0x4e   : > { %2147 = vmatmul.mubr.bf16.vlgmr.msra.gmra.mxu1 %v3371_v7  ;;  %3054 = vmatprep.subr.bf16.mxu0 %v3377_v12  ;;  %v3438_v7 = vld [vmem:[%s4267_s1 + $0x388] sm:$0xff]   ;;  %v3444_v12 = vld [vmem:[%s3689_s10 + $0x34] ss:$100 sps:$4 sm:$0xff]  }
  0x4f   : > { %3075 = vmatpush3.bf16.msra.mxu1 %v3376_v11  ;;  %2228 = vmatprep.mubr.bf16.mxu1 %v3411_v44  ;;  %v3442_v11 = vld [vmem:[%s3689_s10 + $0x30] ss:$100 sps:$4 sm:$0xff]   ;;  %v3477_v44 = vld [vmem:[%s4267_s1 + $0x440] sm:$0xff]  }
  0x50   : > { %3076 = vmatprep.subr.bf16.mxu1 %v3379_v14  ;;  %v3446_v14 = vld [vmem:[%s4267_s1 + $0x478] sm:$0xff]  }
  0x51   : > { %3055 = vmatpush3.bf16.msra.mxu0 %v3378_v13  ;;  %v3445_v13 = vld [vmem:[%s4267_s1 + $0x380] sm:$0xff]  }
  0x52   : > { %3056 = vmatprep.subr.bf16.mxu0 %v3381_v16  ;;  %v3449_v16 = vld [vmem:[%s3689_s10 + $0x3c] ss:$100 sps:$4 sm:$0xff]  }
  0x53   : > { %3077 = vmatpush3.bf16.msra.mxu1 %v3380_v15  ;;  %v3447_v15 = vld [vmem:[%s3689_s10 + $0x38] ss:$100 sps:$4 sm:$0xff]  }
  0x54   : > { %3078 = vmatprep.subr.bf16.mxu1 %v3383_v18  ;;  %v3451_v18 = vld [vmem:[%s4267_s1 + $0x4f8] sm:$0xff]  }
  0x55   : > { %3057 = vmatpush3.bf16.msra.mxu0 %v3382_v17  ;;  %v3450_v17 = vld [vmem:[%s4267_s1 + $0x438] sm:$0xff]  }
  0x56   : > { %3058 = vmatprep.subr.bf16.mxu0 %v3385_v20  ;;  %v3453_v20 = vld [vmem:[%s4267_s1 + $0x470] sm:$0xff]  }
  0x57   : > { %3079 = vmatpush3.bf16.msra.mxu1 %v3384_v19  ;;  %v3452_v19 = vld [vmem:[%s4267_s1 + $0x4b8] sm:$0xff]  }
  0x58   : > { %3080 = vmatprep.subr.bf16.mxu1 %v3387_v22  ;;  %v3455_v22 = vld [vmem:[%s4267_s1 + $0x4f0] sm:$0xff]  }
  0x59   : > { %3059 = vmatpush3.bf16.msra.mxu0 %v3386_v21  ;;  %v3454_v21 = vld [vmem:[%s4267_s1 + $0x430] sm:$0xff]  }
  0x5a   : > { %3060 = vmatprep.subr.bf16.mxu0 %v3389_v24  ;;  %v3457_v24 = vld [vmem:[%s4267_s1 + $0x468] sm:$0xff]  }
  0x5b   : > { %3081 = vmatpush3.bf16.msra.mxu1 %v3388_v23  ;;  %v3456_v23 = vld [vmem:[%s4267_s1 + $0x4b0] sm:$0xff]  }
  0x5c   : > { %3082 = vmatprep.subr.bf16.mxu1 %v3391_v26  ;;  %v3459_v26 = vld [vmem:[%s4267_s1 + $0x4e8] sm:$0xff]  }
  0x5d   : > { %3061 = vmatpush3.bf16.msra.mxu0 %v3390_v25  ;;  %v3458_v25 = vld [vmem:[%s4267_s1 + $0x428] sm:$0xff]  }
  0x5e   : > { %3062 = vmatprep.subr.bf16.mxu0 %v3393_v28  ;;  %v3461_v28 = vld [vmem:[%s4267_s1 + $0x460] sm:$0xff]  }
  0x5f   : > { %3083 = vmatpush3.bf16.msra.mxu1 %v3392_v27  ;;  %v3460_v27 = vld [vmem:[%s4267_s1 + $0x4a8] sm:$0xff]  }
  0x60   : > { %3084 = vmatprep.subr.bf16.mxu1 %v3395_v30  ;;  %v3463_v30 = vld [vmem:[%s4267_s1 + $0x4e0] sm:$0xff]  }
  0x61   : > { %3063 = vmatpush3.bf16.msra.mxu0 %v3394_v29  ;;  %v3462_v29 = vld [vmem:[%s4267_s1 + $0x420] sm:$0xff]  }
  0x62   : > { %3064 = vmatprep.subr.bf16.mxu0 %v3397_v32  ;;  %v3465_v32 = vld [vmem:[%s4267_s1 + $0x458] sm:$0xff]  }
  0x63   : > { %3085 = vmatpush3.bf16.msra.mxu1 %v3396_v31  ;;  %v3464_v31 = vld [vmem:[%s4267_s1 + $0x4a0] sm:$0xff]  }
  0x64   : > { %3086 = vmatprep.subr.bf16.mxu1 %v3399_v34  ;;  %v3467_v34 = vld [vmem:[%s4267_s1 + $0x4d8] sm:$0xff]  }
  0x65   : > { %3065 = vmatpush3.bf16.msra.mxu0 %v3398_v33  ;;  %v3466_v33 = vld [vmem:[%s4267_s1 + $0x418] sm:$0xff]  }
  0x66   : > { %3066 = vmatprep.subr.bf16.mxu0 %v3401_v36  ;;  %v3469_v36 = vld [vmem:[%s4267_s1 + $0x450] sm:$0xff]  }
  0x67   : > { %3087 = vmatpush3.bf16.msra.mxu1 %v3400_v35  ;;  %v3468_v35 = vld [vmem:[%s4267_s1 + $0x498] sm:$0xff]  }
  0x68   : > { %3088 = vmatprep.subr.bf16.mxu1 %v3403_v38  ;;  %v3471_v38 = vld [vmem:[%s4267_s1 + $0x4d0] sm:$0xff]  }
  0x69   : > { %3067 = vmatpush3.bf16.msra.mxu0 %v3402_v37  ;;  %v3470_v37 = vld [vmem:[%s4267_s1 + $0x410] sm:$0xff]  }
  0x6a   : > { %3096 = vmatprep.subr.bf16.mxu0 %v3408_v42  ;;  %v3475_v42 = vld [vmem:[%s4267_s1 + $0x4c8] sm:$0xff]  }
  0x6b   : > { %3089 = vmatpush3.bf16.msra.mxu1 %v3407_v41  ;;  %v3474_v41 = vld [vmem:[%s4267_s1 + $0x408] sm:$0xff]  }
  0x6c   : > { %2188 = vmatmul.mubr.bf16.vlgmr.msra.gmra.mxu0 %v3404_v39  ;;  %3118 = vmatprep.subr.bf16.mxu1 %v3413_v46  ;;  %v3472_v39 = vld [vmem:[%s4267_s1 + $0x490] sm:$0xff]   ;;  %v3479_v46 = vld [vmem:[%s4267_s1 + $0x4c0] sm:$0xff]  }
  0x6d   : > { %3097 = vmatpush3.bf16.msra.mxu0 %v3412_v45  ;;  %2269 = vmatprep.mubr.bf16.mxu0 %v3444_v12  ;;  %v3478_v45 = vld [vmem:[%s4267_s1 + $0x400] sm:$0xff]   ;;  %v3511_v12 = vld [vmem:[%s4267_s1 + $0x548] sm:$0xff]  }
  0x6e   : > { %2229 = vmatmul.mubr.bf16.vlgmr.msra.gmra.mxu1 %v3409_v43  ;;  %3098 = vmatprep.subr.bf16.mxu0 %v3415_v48  ;;  %v3476_v43 = vld [vmem:[%s4267_s1 + $0x488] sm:$0xff]  }
  0x6f   : > { %3119 = vmatpush3.bf16.msra.mxu1 %v3414_v47  ;;  %2310 = vmatprep.mubr.bf16.mxu1 %v3449_v16  ;;  %v3480_v47 = vld [vmem:[%s3689_s10 + $0x40] ss:$100 sps:$4 sm:$0xff]  }
  0x70   : > { %3120 = vmatprep.subr.bf16.mxu1 %v3417_v50  ;;  %v3482_v48 = vld [vmem:[%s3689_s10 + $0x44] ss:$100 sps:$4 sm:$0xff]   ;;  %v3484_v50 = vld [vmem:[%s4267_s1 + $0x578] sm:$0xff]  }
  0x71   : > { %3099 = vmatpush3.bf16.msra.mxu0 %v3416_v49  ;;  %v3483_v49 = vld [vmem:[%s4267_s1 + $0x480] sm:$0xff]  }
  0x72   : > { %3100 = vmatprep.subr.bf16.mxu0 %v3419_v52  ;;  %v3487_v52 = vld [vmem:[%s3689_s10 + $0x4c] ss:$100 sps:$4 sm:$0xff]   ;;  %v3515_v16 = vld [vmem:[%s4267_s1 + $0x540] sm:$0xff]  }
  0x73   : > { %3121 = vmatpush3.bf16.msra.mxu1 %v3418_v51  ;;  %v3485_v51 = vld [vmem:[%s3689_s10 + $0x48] ss:$100 sps:$4 sm:$0xff]  }
  0x74   : > { %3122 = vmatprep.subr.bf16.mxu1 %v3421_v54  ;;  %v3489_v54 = vld [vmem:[%s4267_s1 + $0x5f8] sm:$0xff]  }
  0x75   : > { %3101 = vmatpush3.bf16.msra.mxu0 %v3420_v53  ;;  %v3488_v53 = vld [vmem:[%s4267_s1 + $0x538] sm:$0xff]  }
  0x76   : > { %3102 = vmatprep.subr.bf16.mxu0 %v3423_v56  ;;  %v3491_v56 = vld [vmem:[%s4267_s1 + $0x570] sm:$0xff]  }
  0x77   : > { %3123 = vmatpush3.bf16.msra.mxu1 %v3422_v55  ;;  %v3490_v55 = vld [vmem:[%s4267_s1 + $0x5b8] sm:$0xff]  }
  0x78   : > { %3124 = vmatprep.subr.bf16.mxu1 %v3425_v58  ;;  %v3493_v58 = vld [vmem:[%s4267_s1 + $0x5f0] sm:$0xff]  }
  0x79   : > { %3103 = vmatpush3.bf16.msra.mxu0 %v3424_v57  ;;  %v3492_v57 = vld [vmem:[%s4267_s1 + $0x530] sm:$0xff]  }
  0x7a   : > { %3104 = vmatprep.subr.bf16.mxu0 %v3427_v60  ;;  %v3495_v60 = vld [vmem:[%s4267_s1 + $0x568] sm:$0xff]  }
  0x7b   : > { %3125 = vmatpush3.bf16.msra.mxu1 %v3426_v59  ;;  %v3494_v59 = vld [vmem:[%s4267_s1 + $0x5b0] sm:$0xff]  }
  0x7c   : > { %3126 = vmatprep.subr.bf16.mxu1 %v3429_v62  ;;  %v3497_v62 = vld [vmem:[%s4267_s1 + $0x5e8] sm:$0xff]  }
  0x7d   : > { %3105 = vmatpush3.bf16.msra.mxu0 %v3428_v61  ;;  %v3496_v61 = vld [vmem:[%s4267_s1 + $0x528] sm:$0xff]  }
  0x7e   : > { %3106 = vmatprep.subr.bf16.mxu0 %v3431_v0  ;;  %v3499_v0 = vld [vmem:[%s4267_s1 + $0x560] sm:$0xff]  }
  0x7f   : > { %3127 = vmatpush3.bf16.msra.mxu1 %v3430_v63  ;;  %v3498_v63 = vld [vmem:[%s4267_s1 + $0x5a8] sm:$0xff]  }
  0x80   : > { %3128 = vmatprep.subr.bf16.mxu1 %v3433_v2  ;;  %v3501_v2 = vld [vmem:[%s4267_s1 + $0x5e0] sm:$0xff]  }
  0x81   : > { %3107 = vmatpush3.bf16.msra.mxu0 %v3432_v1  ;;  %v3500_v1 = vld [vmem:[%s4267_s1 + $0x520] sm:$0xff]  }
  0x82   : > { %3108 = vmatprep.subr.bf16.mxu0 %v3435_v4  ;;  %v3503_v4 = vld [vmem:[%s4267_s1 + $0x558] sm:$0xff]  }
  0x83   : > { %3129 = vmatpush3.bf16.msra.mxu1 %v3434_v3  ;;  %v3502_v3 = vld [vmem:[%s4267_s1 + $0x5a0] sm:$0xff]  }
  0x84   : > { %3130 = vmatprep.subr.bf16.mxu1 %v3437_v6  ;;  %v3505_v6 = vld [vmem:[%s4267_s1 + $0x5d8] sm:$0xff]  }
  0x85   : > { %3109 = vmatpush3.bf16.msra.mxu0 %v3436_v5  ;;  %v3504_v5 = vld [vmem:[%s4267_s1 + $0x518] sm:$0xff]  }
  0x86   : > { %3110 = vmatprep.subr.bf16.mxu0 %v3439_v8  ;;  %v3507_v8 = vld [vmem:[%s4267_s1 + $0x550] sm:$0xff]  }
  0x87   : > { %3131 = vmatpush3.bf16.msra.mxu1 %v3438_v7  ;;  %v3506_v7 = vld [vmem:[%s4267_s1 + $0x598] sm:$0xff]  }
  0x88   : > { %3132 = vmatprep.subr.bf16.mxu1 %v3441_v10  ;;  %v3509_v10 = vld [vmem:[%s4267_s1 + $0x5d0] sm:$0xff]  }
  0x89   : > { %3111 = vmatpush3.bf16.msra.mxu0 %v3440_v9  ;;  %v3508_v9 = vld [vmem:[%s4267_s1 + $0x510] sm:$0xff]  }
  0x8a   : > { %3140 = vmatprep.subr.bf16.mxu0 %v3446_v14  ;;  %v3513_v14 = vld [vmem:[%s4267_s1 + $0x5c8] sm:$0xff]  }
  0x8b   : > { %3133 = vmatpush3.bf16.msra.mxu1 %v3445_v13  ;;  %v3512_v13 = vld [vmem:[%s4267_s1 + $0x508] sm:$0xff]  }
  0x8c   : > { %2270 = vmatmul.mubr.bf16.vlgmr.msra.gmra.mxu0 %v3442_v11  ;;  %3162 = vmatprep.subr.bf16.mxu1 %v3451_v18  ;;  %v3510_v11 = vld [vmem:[%s4267_s1 + $0x590] sm:$0xff]   ;;  %v3517_v18 = vld [vmem:[%s4267_s1 + $0x5c0] sm:$0xff]  }
  0x8d   : > { %3141 = vmatpush3.bf16.msra.mxu0 %v3450_v17  ;;  %2351 = vmatprep.mubr.bf16.mxu0 %v3482_v48  ;;  %v3516_v17 = vld [vmem:[%s4267_s1 + $0x500] sm:$0xff]  }
  0x8e   : > { %2311 = vmatmul.mubr.bf16.vlgmr.msra.gmra.mxu1 %v3447_v15  ;;  %3142 = vmatprep.subr.bf16.mxu0 %v3453_v20  ;;  %v3514_v15 = vld [vmem:[%s4267_s1 + $0x588] sm:$0xff]   ;;  %v3520_v20 = vld [vmem:[%s3689_s10 + $0x54] ss:$100 sps:$4 sm:$0xff]  }
  0x8f   : > { %3163 = vmatpush3.bf16.msra.mxu1 %v3452_v19  ;;  %2392 = vmatprep.mubr.bf16.mxu1 %v3487_v52  ;;  %v3518_v19 = vld [vmem:[%s3689_s10 + $0x50] ss:$100 sps:$4 sm:$0xff]  }
  0x90   : > { %3164 = vmatprep.subr.bf16.mxu1 %v3455_v22  ;;  %v3554_v22 = vmov 0.0  }
  0x91   : > { %3143 = vmatpush3.bf16.msra.mxu0 %v3454_v21  ;;  %v3521_v21 = vld [vmem:[%s4267_s1 + $0x580] sm:$0xff]  }
  0x92   : > { %3144 = vmatprep.subr.bf16.mxu0 %v3457_v24  ;;  %v3524_v24 = vld [vmem:[%s3689_s10 + $0x5c] ss:$100 sps:$4 sm:$0xff]  }
  0x93   : > { %3165 = vmatpush3.bf16.msra.mxu1 %v3456_v23  ;;  %v3522_v23 = vld [vmem:[%s3689_s10 + $0x58] ss:$100 sps:$4 sm:$0xff]  }
  0x94   : > { %3166 = vmatprep.subr.bf16.mxu1 %v3459_v26  ;;  %v3526_v26 = vld [vmem:[%s4267_s1 + $0x630] sm:$0xff]  }
  0x95   : > { %3145 = vmatpush3.bf16.msra.mxu0 %v3458_v25  ;;  %v3525_v25 = vld [vmem:[%s4267_s1 + $0x638] sm:$0xff]  }
  0x96   : > { %3146 = vmatprep.subr.bf16.mxu0 %v3461_v28  ;;  %v3528_v28 = vld [vmem:[%s4267_s1 + $0x620] sm:$0xff]  }
  0x97   : > { %3167 = vmatpush3.bf16.msra.mxu1 %v3460_v27  ;;  %v3527_v27 = vld [vmem:[%s4267_s1 + $0x628] sm:$0xff]  }
  0x98   : > { %3168 = vmatprep.subr.bf16.mxu1 %v3463_v30  ;;  %v3530_v30 = vld [vmem:[%s4267_s1 + $0x610] sm:$0xff]  }
  0x99   : > { %3147 = vmatpush3.bf16.msra.mxu0 %v3462_v29  ;;  %v3529_v29 = vld [vmem:[%s4267_s1 + $0x618] sm:$0xff]  }
  0x9a   : > { %3148 = vmatprep.subr.bf16.mxu0 %v3465_v32  ;;  %v3532_v32 = vld [vmem:[%s4267_s1 + $0x600] sm:$0xff]  }
  0x9b   : > { %3169 = vmatpush3.bf16.msra.mxu1 %v3464_v31  ;;  %v3531_v31 = vld [vmem:[%s4267_s1 + $0x608] sm:$0xff]  }
  0x9c   : > { %3170 = vmatprep.subr.bf16.mxu1 %v3467_v34  ;;  %v3534_v34 = vld [vmem:[%s4269_s3 + $0x38] sm:$0xff]  }
  0x9d   : > { %3149 = vmatpush3.bf16.msra.mxu0 %v3466_v33  ;;  %v3533_v33 = vld [vmem:[%s3689_s10 + $0x60] ss:$100 sps:$4 sm:$0xff]  }
  0x9e   : > { %3150 = vmatprep.subr.bf16.mxu0 %v3469_v36  ;;  %v3536_v36 = vld [vmem:[%s4269_s3 + $0x28] sm:$0xff]  }
  0x9f   : > { %3171 = vmatpush3.bf16.msra.mxu1 %v3468_v35  ;;  %v3535_v35 = vld [vmem:[%s4269_s3 + $0x30] sm:$0xff]  }
  0xa0   : > { %3172 = vmatprep.subr.bf16.mxu1 %v3471_v38  ;;  %v3538_v38 = vld [vmem:[%s4269_s3 + $0x18] sm:$0xff]  }
  0xa1   : > { %3151 = vmatpush3.bf16.msra.mxu0 %v3470_v37  ;;  %v3537_v37 = vld [vmem:[%s4269_s3 + $0x20] sm:$0xff]  }
  0xa2   : > { %3152 = vmatprep.subr.bf16.mxu0 %v3473_v40  ;;  %v3540_v40 = vld [vmem:[%s4269_s3 + $0x8] sm:$0xff]  }
  0xa3   : > { %3173 = vmatpush3.bf16.msra.mxu1 %v3472_v39  ;;  %v3539_v39 = vld [vmem:[%s4269_s3 + $0x10] sm:$0xff]  }
  0xa4   : > { %3174 = vmatprep.subr.bf16.mxu1 %v3475_v42 }
  0xa5   : > { %3153 = vmatpush3.bf16.msra.mxu0 %v3474_v41  ;;  %v3541_v41 = vld [vmem:[%s4269_s3] sm:$0xff]  }
  0xa6   : > { %3154 = vmatprep.subr.bf16.mxu0 %v3477_v44 }
  0xa7   : > { %3175 = vmatpush3.bf16.msra.mxu1 %v3476_v43 }
  0xa8   : > { %3176 = vmatprep.subr.bf16.mxu1 %v3479_v46 }
  0xa9   : > { %3155 = vmatpush3.bf16.msra.mxu0 %v3478_v45 }
  0xaa   : > { %3184 = vmatprep.subr.bf16.mxu0 %v3484_v50 }
  0xab   : > { %3177 = vmatpush3.bf16.msra.mxu1 %v3483_v49 }
  0xac   : > { %2352 = vmatmul.mubr.bf16.vlgmr.msra.gmra.mxu0 %v3480_v47  ;;  %3206 = vmatprep.subr.bf16.mxu1 %v3489_v54 }
  0xad   : > { %3185 = vmatpush3.bf16.msra.mxu0 %v3488_v53  ;;  %2433 = vmatprep.mubr.bf16.mxu0 %v3520_v20 }
  0xae   : > { %2393 = vmatmul.mubr.bf16.vlgmr.msra.gmra.mxu1 %v3485_v51  ;;  %3186 = vmatprep.subr.bf16.mxu0 %v3491_v56 }
  0xaf   : > { %3207 = vmatpush3.bf16.msra.mxu1 %v3490_v55  ;;  %2474 = vmatprep.mubr.bf16.mxu1 %v3524_v24 }
  0xb0   : > { %3208 = vmatprep.subr.bf16.mxu1 %v3493_v58 }
  0xb1   : > { %3187 = vmatpush3.bf16.msra.mxu0 %v3492_v57 }
  0xb2   : > { %3188 = vmatprep.subr.bf16.mxu0 %v3495_v60 }
  0xb3   : > { %3209 = vmatpush3.bf16.msra.mxu1 %v3494_v59 }
  0xb4   : > { %3210 = vmatprep.subr.bf16.mxu1 %v3497_v62 }
  0xb5   : > { %3189 = vmatpush3.bf16.msra.mxu0 %v3496_v61 }
  0xb6   : > { %3190 = vmatprep.subr.bf16.mxu0 %v3499_v0 }
  0xb7   : > { %3211 = vmatpush3.bf16.msra.mxu1 %v3498_v63 }
  0xb8   : > { %3212 = vmatprep.subr.bf16.mxu1 %v3501_v2 }
  0xb9   : > { %3191 = vmatpush3.bf16.msra.mxu0 %v3500_v1 }
  0xba   : > { %3192 = vmatprep.subr.bf16.mxu0 %v3503_v4 }
  0xbb   : > { %3213 = vmatpush3.bf16.msra.mxu1 %v3502_v3 }
  0xbc   : > { %3214 = vmatprep.subr.bf16.mxu1 %v3505_v6 }
  0xbd   : > { %3193 = vmatpush3.bf16.msra.mxu0 %v3504_v5 }
  0xbe   : > { %3194 = vmatprep.subr.bf16.mxu0 %v3507_v8  ;;  %v2718_v8 = vld [vmem:[%s4268_s2] ss:$0 sm:$0xff] }
  0xbf   : > { %3215 = vmatpush3.bf16.msra.mxu1 %v3506_v7 }
  0xc0   : > { %3216 = vmatprep.subr.bf16.mxu1 %v3509_v10 }
  0xc1   : > { %3195 = vmatpush3.bf16.msra.mxu0 %v3508_v9 }
  0xc2   : > { %3196 = vmatprep.subr.bf16.mxu0 %v3511_v12 }
  0xc3   : > { %3217 = vmatpush3.bf16.msra.mxu1 %v3510_v11 }
  0xc4   : > { %3218 = vmatprep.subr.bf16.mxu1 %v3513_v14 }
  0xc5   : > { %3197 = vmatpush3.bf16.msra.mxu0 %v3512_v13 }
  0xc6   : > { %3198 = vmatprep.subr.bf16.mxu0 %v3515_v16 }
  0xc7   : > { %3219 = vmatpush3.bf16.msra.mxu1 %v3514_v15 }
  0xc8   : > { %3220 = vmatprep.subr.bf16.mxu1 %v3517_v18 }
  0xc9   : > { %3199 = vmatpush3.bf16.msra.mxu0 %v3516_v17 }
  0xca   : > { %3246 = vmatprep.subr.bf16.mxu0 %v3554_v22 }
  0xcb   : > { %3221 = vmatpush3.bf16.msra.mxu1 %v3521_v21 }
  0xcc   : > { %2434 = vmatmul.mubr.bf16.vlgmr.msra.gmra.mxu0 %v3518_v19  ;;  %3266 = vmatprep.subr.bf16.mxu1 %v3554_v22 }
  0xcd   : > { %3262 = vmatprep.mubr.msk.bf16.mxu0 %vm3555_vm0, %v3554_v22  ;;  %3247 = vmatpush3.bf16.msra.mxu0 %v3525_v25 }
  0xce   : > { %2475 = vmatmul.mubr.bf16.vlgmr.msra.gmra.mxu1 %v3522_v23  ;;  %3248 = vmatprep.subr.bf16.mxu0 %v3554_v22 }
  0xcf   : > { %3282 = vmatprep.mubr.msk.bf16.mxu1 %vm3555_vm0, %v3554_v22  ;;  %3267 = vmatpush3.bf16.msra.mxu1 %v3534_v34 }
  0xd0   : > { %3268 = vmatprep.subr.bf16.mxu1 %v3554_v22 }
  0xd1   : > { %3249 = vmatpush3.bf16.msra.mxu0 %v3526_v26 }
  0xd2   : > { %3250 = vmatprep.subr.bf16.mxu0 %v3554_v22 }
  0xd3   : > { %3269 = vmatpush3.bf16.msra.mxu1 %v3535_v35 }
  0xd4   : > { %3270 = vmatprep.subr.bf16.mxu1 %v3554_v22 }
  0xd5   : > { %3251 = vmatpush3.bf16.msra.mxu0 %v3527_v27 }
  0xd6   : > { %3252 = vmatprep.subr.bf16.mxu0 %v3554_v22 }
  0xd7   : > { %3271 = vmatpush3.bf16.msra.mxu1 %v3536_v36 }
  0xd8   : > { %3272 = vmatprep.subr.bf16.mxu1 %v3554_v22 }
  0xd9   : > { %3253 = vmatpush3.bf16.msra.mxu0 %v3528_v28 }
  0xda   : > { %3254 = vmatprep.subr.bf16.mxu0 %v3554_v22 }
  0xdb   : > { %3273 = vmatpush3.bf16.msra.mxu1 %v3537_v37 }
  0xdc   : > { %3274 = vmatprep.subr.bf16.mxu1 %v3554_v22 }
  0xdd   : > { %3255 = vmatpush3.bf16.msra.mxu0 %v3529_v29 }
  0xde   : > { %3256 = vmatprep.subr.bf16.mxu0 %v3554_v22 }
  0xdf   : > { %3275 = vmatpush3.bf16.msra.mxu1 %v3538_v38 }
  0xe0   : > { %3276 = vmatprep.subr.bf16.mxu1 %v3554_v22 }
  0xe1   : > { %3257 = vmatpush3.bf16.msra.mxu0 %v3530_v30 }
  0xe2   : > { %3258 = vmatprep.subr.bf16.mxu0 %v3554_v22 }
  0xe3   : > { %3277 = vmatpush3.bf16.msra.mxu1 %v3539_v39 }
  0xe4   : > { %3278 = vmatprep.subr.bf16.mxu1 %v3554_v22 }
  0xe5   : > { %3259 = vmatpush3.bf16.msra.mxu0 %v3531_v31 }
  0xe6   : > { %3260 = vmatprep.subr.bf16.mxu0 %v3554_v22 }
  0xe7   : > { %3279 = vmatpush3.bf16.msra.mxu1 %v3540_v40 }
  0xe8   : > { %3280 = vmatprep.subr.bf16.mxu1 %v3554_v22 }
  0xe9   : > { %3261 = vmatpush3.bf16.msra.mxu0 %v3532_v32 }
  0xeb   : > { %3281 = vmatpush3.bf16.msra.mxu1 %v3541_v41 }
  0xec   : > { %3263 = vmatmul.mubr.bf16.vlgmr.msra.gmra.mxu0 %v3533_v33  ;;  %v2980_v42 = vpop.f32.mrf.mxu0 }
  0xee   : > { %v2981_v43 = vpop.f32.mrf.mxu0  ;;  %v3002_v44 = vpop.f32.mrf.mxu1 }
  0xef   : > { %v2982_v7 = vadd.f32 %v2981_v43, %v2980_v42 }
  0xf0   : > { %v2983_v45 = vpop.f32.mrf.mxu0  ;;  %v3003_v46 = vpop.f32.mrf.mxu1 }
  0xf1   : > { %v2026_v13 = vadd.f32 %v2982_v7, %v2718_v8  ;;  %v3004_v14 = vadd.f32 %v3003_v46, %v3002_v44 }
  0xf2   : > { %v2984_v47 = vpop.f32.mrf.mxu0  ;;  %v3005_v48 = vpop.f32.mrf.mxu1 }
  0xf3   : > { %v2985_v11 = vadd.f32 %v2984_v47, %v2983_v45  ;;  %v2067_v21 = vadd.f32 %v3004_v14, %v2026_v13 }
  0xf4   : > { %v3006_v50 = vpop.f32.mrf.mxu1 }
  0xf5   : > { %v2029_v16 = vadd.f32 %v2985_v11, %v2718_v8  ;;  %v3007_v17 = vadd.f32 %v3006_v50, %v3005_v48 }
  0xf7   : > { %v2070_v23 = vadd.f32 %v3007_v17, %v2029_v16 }
 0x10c   : > { %v3024_v49 = vpop.f32.mrf.mxu0 }
 0x10e   : > { %v3025_v51 = vpop.f32.mrf.mxu0  ;;  %v3046_v52 = vpop.f32.mrf.mxu1 }
 0x10f   : > { %v3026_v18 = vadd.f32 %v3025_v51, %v3024_v49 }
 0x110   : > { %v3027_v53 = vpop.f32.mrf.mxu0  ;;  %v3047_v54 = vpop.f32.mrf.mxu1 }
 0x111   : > { %v2108_v24 = vadd.f32 %v3026_v18, %v2067_v21  ;;  %v3048_v25 = vadd.f32 %v3047_v54, %v3046_v52 }
 0x112   : > { %v3028_v55 = vpop.f32.mrf.mxu0  ;;  %v3049_v56 = vpop.f32.mrf.mxu1 }
 0x113   : > { %v3029_v22 = vadd.f32 %v3028_v55, %v3027_v53  ;;  %v2149_v31 = vadd.f32 %v3048_v25, %v2108_v24 }
 0x114   : > { %v3050_v58 = vpop.f32.mrf.mxu1 }
 0x115   : > { %v2111_v28 = vadd.f32 %v3029_v22, %v2070_v23  ;;  %v3051_v29 = vadd.f32 %v3050_v58, %v3049_v56 }
 0x117   : > { %v2152_v35 = vadd.f32 %v3051_v29, %v2111_v28 }
 0x12c   : > { %v3068_v57 = vpop.f32.mrf.mxu0 }
 0x12e   : > { %v3069_v59 = vpop.f32.mrf.mxu0  ;;  %v3090_v60 = vpop.f32.mrf.mxu1 }
 0x12f   : > { %v3070_v30 = vadd.f32 %v3069_v59, %v3068_v57 }
 0x130   : > { %v3071_v61 = vpop.f32.mrf.mxu0  ;;  %v3091_v62 = vpop.f32.mrf.mxu1 }
 0x131   : > { %v2190_v36 = vadd.f32 %v3070_v30, %v2149_v31  ;;  %v3092_v37 = vadd.f32 %v3091_v62, %v3090_v60 }
 0x132   : > { %v3072_v63 = vpop.f32.mrf.mxu0  ;;  %v3093_v0 = vpop.f32.mrf.mxu1 }
 0x133   : > { %v3073_v32 = vadd.f32 %v3072_v63, %v3071_v61  ;;  %v2231_v43 = vadd.f32 %v3092_v37, %v2190_v36 }
 0x134   : > { %v3094_v2 = vpop.f32.mrf.mxu1 }
 0x135   : > { %v2193_v39 = vadd.f32 %v3073_v32, %v2152_v35  ;;  %v3095_v40 = vadd.f32 %v3094_v2, %v3093_v0 }
 0x137   : > { %v2234_v47 = vadd.f32 %v3095_v40, %v2193_v39 }
 0x14c   : > { %v3112_v1 = vpop.f32.mrf.mxu0 }
 0x14e   : > { %v3113_v3 = vpop.f32.mrf.mxu0  ;;  %v3134_v4 = vpop.f32.mrf.mxu1 }
 0x14f   : > { %v3114_v41 = vadd.f32 %v3113_v3, %v3112_v1 }
 0x150   : > { %v3115_v5 = vpop.f32.mrf.mxu0  ;;  %v3135_v6 = vpop.f32.mrf.mxu1 }
 0x151   : > { %v2272_v48 = vadd.f32 %v3114_v41, %v2231_v43  ;;  %v3136_v49 = vadd.f32 %v3135_v6, %v3134_v4 }
 0x152   : > { %v3116_v9 = vpop.f32.mrf.mxu0  ;;  %v3137_v10 = vpop.f32.mrf.mxu1 }
 0x153   : > { %v3117_v44 = vadd.f32 %v3116_v9, %v3115_v5  ;;  %v2313_v55 = vadd.f32 %v3136_v49, %v2272_v48 }
 0x154   : > { %v3138_v15 = vpop.f32.mrf.mxu1 }
 0x155   : > { %v2275_v50 = vadd.f32 %v3117_v44, %v2234_v47  ;;  %v3139_v51 = vadd.f32 %v3138_v15, %v3137_v10 }
 0x157   : > { %v2316_v57 = vadd.f32 %v3139_v51, %v2275_v50 }
 0x16c   : > { %v3156_v12 = vpop.f32.mrf.mxu0 }
 0x16e   : > { %v3157_v19 = vpop.f32.mrf.mxu0  ;;  %v3178_v20 = vpop.f32.mrf.mxu1 }
 0x16f   : > { %v3158_v52 = vadd.f32 %v3157_v19, %v3156_v12 }
 0x170   : > { %v3159_v26 = vpop.f32.mrf.mxu0  ;;  %v3179_v27 = vpop.f32.mrf.mxu1 }
 0x171   : > { %v2354_v58 = vadd.f32 %v3158_v52, %v2313_v55  ;;  %v3180_v59 = vadd.f32 %v3179_v27, %v3178_v20  ;;  %v2944_v20 = vld [vmem:[%s4270_s4] ss:$0 sm:$0xff] }
 0x172   : > { %v3160_v33 = vpop.f32.mrf.mxu0  ;;  %v3181_v34 = vpop.f32.mrf.mxu1 }
 0x173   : > { %v3161_v56 = vadd.f32 %v3160_v33, %v3159_v26  ;;  %v2395_v1 = vadd.f32 %v3180_v59, %v2354_v58 }
 0x174   : > { %v3182_v42 = vpop.f32.mrf.mxu1 }
 0x175   : > { %v2357_v62 = vadd.f32 %v3161_v56, %v2316_v57  ;;  %v3183_v63 = vadd.f32 %v3182_v42, %v3181_v34 }
 0x177   : > { %v2398_v5 = vadd.f32 %v3183_v63, %v2357_v62 }
 0x18c   : > { %v3200_v38 = vpop.f32.mrf.mxu0 }
 0x18e   : > { %v3201_v45 = vpop.f32.mrf.mxu0  ;;  %v3222_v46 = vpop.f32.mrf.mxu1 }
 0x18f   : > { %v3202_v0 = vadd.f32 %v3201_v45, %v3200_v38 }
 0x190   : > { %v3203_v53 = vpop.f32.mrf.mxu0  ;;  %v3223_v54 = vpop.f32.mrf.mxu1 }
 0x191   : > { %v2436_v4 = vadd.f32 %v3202_v0, %v2395_v1  ;;  %v3224_v6 = vadd.f32 %v3223_v54, %v3222_v46 }
 0x192   : > { %v3204_v60 = vpop.f32.mrf.mxu0  ;;  %v3225_v61 = vpop.f32.mrf.mxu1 }
 0x193   : > { %v3205_v2 = vadd.f32 %v3204_v60, %v3203_v53  ;;  %v2477_v10 = vadd.f32 %v3224_v6, %v2436_v4 }
 0x194   : > { %v3226_v3 = vpop.f32.mrf.mxu1 }
 0x195   : > { %v2439_v7 = vadd.f32 %v3205_v2, %v2398_v5  ;;  %v3227_v8 = vadd.f32 %v3226_v3, %v3225_v61 }
 0x197   : > { %v2480_v13 = vadd.f32 %v3227_v8, %v2439_v7 }
 0x1ac   : > { %v2517_v9 = vpop.f32.mrf.mxu0 }
 0x1ad   : > { %v2518_v12 = vadd.f32 %v2517_v9, %v2477_v10 }
 0x1ae   : > { %v3264_v11 = vpop.f32.mrf.mxu0 }
 0x1af   : > { %v2524_v17 = vmul.f32 %v2518_v12, %v2518_v12 }
 0x1b0   : > { %v2520_v14 = vpop.f32.mrf.mxu0 }
 0x1b1   : > { %v2521_v15 = vadd.f32 %v2520_v14, %v2480_v13 }
 0x1b2   : > { %v3265_v16 = vpop.f32.mrf.mxu0 }
 0x1b3   : > { %v2525_v18 = vmul.f32 %v2521_v15, %v2521_v15 }
 0x1b5   : > { %v2526_v19 = vpack.c.bf16 %v2525_v18, %v2524_v17 }
 0x1b7   : > { %3283 = vmatmul.mubr.bf16.vlgmr.msra.gmra.mxu1 %v2526_v19 }
 0x277   : > { %v2632_v21 = vpop.f32.mrf.mxu1 }
 0x278   : > { %v2633_v22 = vadd.f32 %v2944_v20, %v2632_v21 }
 0x279   : > { %v3284_v23 = vpop.f32.mrf.mxu1 }
 0x27a   : > { %3542 = vrsqrt.f32 %v2633_v22 }
 0x27b   : > { %v2635_v24 = vpop.f32.mrf.mxu1 }
 0x27c   : > { %v2636_v25 = vadd.f32 %v2944_v20, %v2635_v24 }
 0x27d   : > { %v3285_v26 = vpop.f32.mrf.mxu1 }
 0x27e   : > { %3544 = vrsqrt.f32 %v2636_v25 }
 0x287   : > { %v3543_v27 = vpop.eup %3542 }
 0x288   : > { %v2641_v29 = vmul.f32 %v3543_v27, %v2518_v12 }
 0x28b   : > { %v3545_v28 = vpop.eup %3544 }
 0x28c   : > { %v2642_v30 = vmul.f32 %v3545_v28, %v2521_v15 }
 0x28e   : > { %v2962_v31 = vpack.c.bf16 %v2642_v30, %v2641_v29 }
 0x290   : > { %2963 = vst [vmem:[%s229_s26] sm:$0xff] %v2962_v31  }
 0x291 PF: > { %s15_s18 = sadd.s32 1, %s3552_s18  }
 0x292   : > { %p12_p4 = scmp.ge.s32.totalorder %s15_s18, 4  }
 0x294   :  { %14 = sbr.rel (!%p12_p4) target bundleno = 1 (0x1), region = 70 }

// kernel: analysis_forward.5
= control target key start
LH: loop header
LB: loop body
LE: loop exit
PB: predicated region body
PF: predicated region fallthrough
CT: control target
= control target key end

     0   :  { %vm3018_vm0 = vmmov 0   ;;  %s3677_s0 = inlined_call_operand.vmem [shape: bf16[8,3200], index: 0, kind: input, shape index: {}]   ;;  %s3678_s1 = inlined_call_operand.vmem [shape: bf16[3200,128], index: 1, kind: input, shape index: {}]   ;;  %s3679_s2 = inlined_call_operand.hbm [shape: f32[8,128], index: 2, kind: output, shape index: {}]  }
   0x1   :  { %v2770_v0 = vld [vmem:[%s3678_s1 + $0x78] sm:$0xff]   ;;  %v2774_v4 = vld [vmem:[%s3678_s1 + $0x70] sm:$0xff]   ;;  %v2778_v8 = vld [vmem:[%s3678_s1 + $0x68] sm:$0xff]  }
   0x2   :  { %v2771_v1 = vld [vmem:[%s3678_s1 + $0xf8] sm:$0xff]   ;;  %2474 = vmatprep.subr.bf16.mxu0 %v2770_v0  ;;  %v2775_v5 = vld [vmem:[%s3678_s1 + $0xf0] sm:$0xff]   ;;  %v2779_v9 = vld [vmem:[%s3678_s1 + $0xe8] sm:$0xff]  }
   0x3   :  { %v2772_v2 = vld [vmem:[%s3678_s1 + $0x38] sm:$0xff]   ;;  %2496 = vmatprep.subr.bf16.mxu1 %v2771_v1  ;;  %v2776_v6 = vld [vmem:[%s3678_s1 + $0x30] sm:$0xff]   ;;  %v2780_v10 = vld [vmem:[%s3678_s1 + $0x28] sm:$0xff]  }
   0x4   :  { %v2773_v3 = vld [vmem:[%s3678_s1 + $0xb8] sm:$0xff]   ;;  %2475 = vmatpush3.bf16.msra.mxu0 %v2772_v2  ;;  %v2777_v7 = vld [vmem:[%s3678_s1 + $0xb0] sm:$0xff]   ;;  %v2781_v11 = vld [vmem:[%s3678_s1 + $0xa8] sm:$0xff]  }
   0x5   :  { %2497 = vmatpush3.bf16.msra.mxu1 %v2773_v3  ;;  %2476 = vmatprep.subr.bf16.mxu0 %v2774_v4  ;;  %v2782_v12 = vld [vmem:[%s3678_s1 + $0x60] sm:$0xff]   ;;  %v2786_v16 = vld [vmem:[%s3678_s1 + $0x58] sm:$0xff]   ;;  %v2790_v20 = vld [vmem:[%s3678_s1 + $0x50] sm:$0xff]  }
   0x6   :  { %2498 = vmatprep.subr.bf16.mxu1 %v2775_v5  ;;  %v2783_v13 = vld [vmem:[%s3678_s1 + $0xe0] sm:$0xff]   ;;  %v2787_v17 = vld [vmem:[%s3678_s1 + $0xd8] sm:$0xff]   ;;  %v2791_v21 = vld [vmem:[%s3678_s1 + $0xd0] sm:$0xff]  }
   0x7   :  { %v2784_v14 = vld [vmem:[%s3678_s1 + $0x20] sm:$0xff]   ;;  %v2788_v18 = vld [vmem:[%s3678_s1 + $0x18] sm:$0xff]   ;;  %v2792_v22 = vld [vmem:[%s3678_s1 + $0x10] sm:$0xff]  }
   0x8   :  { %2477 = vmatpush3.bf16.msra.mxu0 %v2776_v6  ;;  %v2785_v15 = vld [vmem:[%s3678_s1 + $0xa0] sm:$0xff]   ;;  %v2789_v19 = vld [vmem:[%s3678_s1 + $0x98] sm:$0xff]   ;;  %v2793_v23 = vld [vmem:[%s3678_s1 + $0x90] sm:$0xff]  }
   0x9   :  { %2499 = vmatpush3.bf16.msra.mxu1 %v2777_v7  ;;  %2478 = vmatprep.subr.bf16.mxu0 %v2778_v8  ;;  %v2794_v24 = vld [vmem:[%s3678_s1 + $0x48] sm:$0xff]   ;;  %v2798_v28 = vld [vmem:[%s3678_s1 + $0x40] sm:$0xff]   ;;  %v2806_v38 = vld [vmem:[%s3678_s1 + $0x178] sm:$0xff]  }
   0xa   :  { %2500 = vmatprep.subr.bf16.mxu1 %v2779_v9  ;;  %v2795_v25 = vld [vmem:[%s3678_s1 + $0xc8] sm:$0xff]   ;;  %v2799_v29 = vld [vmem:[%s3678_s1 + $0xc0] sm:$0xff]   ;;  %v2807_v39 = vld [vmem:[%s3678_s1 + $0x138] sm:$0xff]  }
   0xb   :  { %v2796_v26 = vld [vmem:[%s3678_s1 + $0x8] sm:$0xff]   ;;  %v2800_v30 = vld [vmem:[%s3678_s1] sm:$0xff]   ;;  %v2808_v40 = vld [vmem:[%s3678_s1 + $0x1f8] sm:$0xff]  }
   0xc   :  { %2479 = vmatpush3.bf16.msra.mxu0 %v2780_v10  ;;  %v2797_v27 = vld [vmem:[%s3678_s1 + $0x88] sm:$0xff]   ;;  %v2801_v31 = vld [vmem:[%s3678_s1 + $0x80] sm:$0xff]   ;;  %v2809_v41 = vld [vmem:[%s3678_s1 + $0x1b8] sm:$0xff]  }
   0xd   :  { %2501 = vmatpush3.bf16.msra.mxu1 %v2781_v11  ;;  %2480 = vmatprep.subr.bf16.mxu0 %v2782_v12  ;;  %v13_v32 = vld [vmem:[%s3677_s0] sm:$0xff]  ;;  %v14_v33 = vld [vmem:[%s3677_s0 + $0x8] sm:$0xff]  ;;  %v2810_v42 = vld [vmem:[%s3678_s1 + $0x170] sm:$0xff]  }
   0xe   :  { %2502 = vmatprep.subr.bf16.mxu1 %v2783_v13  ;;  %v2249_v34 = vcombine.low %v13_v32, %v13_v32  ;;  %v2250_v35 = vcombine.high %v13_v32, %v13_v32  ;;  %v2251_v36 = vcombine.low %v14_v33, %v14_v33  ;;  %v2252_v37 = vcombine.high %v14_v33, %v14_v33  ;;  %v2811_v43 = vld [vmem:[%s3678_s1 + $0x130] sm:$0xff]   ;;  %v2814_v46 = vld [vmem:[%s3678_s1 + $0x168] sm:$0xff]   ;;  %v2818_v50 = vld [vmem:[%s3678_s1 + $0x160] sm:$0xff]  }
   0xf   :  { %v2812_v44 = vld [vmem:[%s3678_s1 + $0x1f0] sm:$0xff]   ;;  %v2815_v47 = vld [vmem:[%s3678_s1 + $0x128] sm:$0xff]   ;;  %v2819_v51 = vld [vmem:[%s3678_s1 + $0x120] sm:$0xff]  }
  0x10   :  { %2481 = vmatpush3.bf16.msra.mxu0 %v2784_v14  ;;  %1746 = vmatprep.mubr.bf16.mxu0 %v2250_v35  ;;  %v2813_v45 = vld [vmem:[%s3678_s1 + $0x1b0] sm:$0xff]   ;;  %v2816_v48 = vld [vmem:[%s3678_s1 + $0x1e8] sm:$0xff]   ;;  %v2820_v52 = vld [vmem:[%s3678_s1 + $0x1e0] sm:$0xff]  }
  0x11   :  { %2503 = vmatpush3.bf16.msra.mxu1 %v2785_v15  ;;  %2482 = vmatprep.subr.bf16.mxu0 %v2786_v16  ;;  %v2817_v49 = vld [vmem:[%s3678_s1 + $0x1a8] sm:$0xff]   ;;  %v2821_v53 = vld [vmem:[%s3678_s1 + $0x1a0] sm:$0xff]   ;;  %v2822_v54 = vld [vmem:[%s3678_s1 + $0x158] sm:$0xff]  }
  0x12   :  { %2504 = vmatprep.subr.bf16.mxu1 %v2787_v17  ;;  %1786 = vmatprep.mubr.bf16.mxu1 %v2252_v37  ;;  %v2823_v55 = vld [vmem:[%s3678_s1 + $0x118] sm:$0xff]   ;;  %v2826_v58 = vld [vmem:[%s3678_s1 + $0x150] sm:$0xff]   ;;  %v2830_v62 = vld [vmem:[%s3678_s1 + $0x148] sm:$0xff]  }
  0x13   :  { %v2824_v56 = vld [vmem:[%s3678_s1 + $0x1d8] sm:$0xff]   ;;  %v2827_v59 = vld [vmem:[%s3678_s1 + $0x110] sm:$0xff]   ;;  %v2831_v63 = vld [vmem:[%s3678_s1 + $0x108] sm:$0xff]  }
  0x14   :  { %2483 = vmatpush3.bf16.msra.mxu0 %v2788_v18  ;;  %v2825_v57 = vld [vmem:[%s3678_s1 + $0x198] sm:$0xff]   ;;  %v2828_v60 = vld [vmem:[%s3678_s1 + $0x1d0] sm:$0xff]   ;;  %v2832_v0 = vld [vmem:[%s3678_s1 + $0x1c8] sm:$0xff]  }
  0x15   :  { %2505 = vmatpush3.bf16.msra.mxu1 %v2789_v19  ;;  %2484 = vmatprep.subr.bf16.mxu0 %v2790_v20  ;;  %v2829_v61 = vld [vmem:[%s3678_s1 + $0x190] sm:$0xff]   ;;  %v2833_v1 = vld [vmem:[%s3678_s1 + $0x188] sm:$0xff]   ;;  %v2834_v2 = vld [vmem:[%s3678_s1 + $0x140] sm:$0xff]  }
  0x16   :  { %2506 = vmatprep.subr.bf16.mxu1 %v2791_v21  ;;  %v2835_v3 = vld [vmem:[%s3678_s1 + $0x100] sm:$0xff]   ;;  %v15_v5 = vld [vmem:[%s3677_s0 + $0x10] sm:$0xff]  ;;  %v2840_v9 = vld [vmem:[%s3678_s1 + $0x278] sm:$0xff]  }
  0x17   :  { %v2836_v4 = vld [vmem:[%s3678_s1 + $0x1c0] sm:$0xff]   ;;  %v2254_v6 = vcombine.high %v15_v5, %v15_v5  ;;  %v2253_v8 = vcombine.low %v15_v5, %v15_v5  ;;  %v16_v10 = vld [vmem:[%s3677_s0 + $0x18] sm:$0xff]  ;;  %v2846_v16 = vld [vmem:[%s3678_s1 + $0x270] sm:$0xff]  }
  0x18   :  { %2485 = vmatpush3.bf16.msra.mxu0 %v2792_v22  ;;  %v2839_v7 = vld [vmem:[%s3678_s1 + $0x180] sm:$0xff]   ;;  %v2255_v11 = vcombine.low %v16_v10, %v16_v10  ;;  %v2256_v12 = vcombine.high %v16_v10, %v16_v10  ;;  %v2843_v13 = vld [vmem:[%s3678_s1 + $0x238] sm:$0xff]   ;;  %v2847_v17 = vld [vmem:[%s3678_s1 + $0x230] sm:$0xff]  }
  0x19   :  { %2507 = vmatpush3.bf16.msra.mxu1 %v2793_v23  ;;  %2486 = vmatprep.subr.bf16.mxu0 %v2794_v24  ;;  %v2844_v14 = vld [vmem:[%s3678_s1 + $0x2f8] sm:$0xff]   ;;  %v2848_v18 = vld [vmem:[%s3678_s1 + $0x2f0] sm:$0xff]   ;;  %v2850_v20 = vld [vmem:[%s3678_s1 + $0x268] sm:$0xff]  }
  0x1a   :  { %2508 = vmatprep.subr.bf16.mxu1 %v2795_v25  ;;  %v2845_v15 = vld [vmem:[%s3678_s1 + $0x2b8] sm:$0xff]   ;;  %v2849_v19 = vld [vmem:[%s3678_s1 + $0x2b0] sm:$0xff]   ;;  %v2851_v21 = vld [vmem:[%s3678_s1 + $0x228] sm:$0xff]  }
  0x1b   :  { %v2852_v22 = vld [vmem:[%s3678_s1 + $0x2e8] sm:$0xff]   ;;  %v2854_v24 = vld [vmem:[%s3678_s1 + $0x260] sm:$0xff]   ;;  %v2862_v32 = vld [vmem:[%s3678_s1 + $0x250] sm:$0xff]  }
  0x1c   :  { %2487 = vmatpush3.bf16.msra.mxu0 %v2796_v26  ;;  %v2853_v23 = vld [vmem:[%s3678_s1 + $0x2a8] sm:$0xff]   ;;  %v2855_v25 = vld [vmem:[%s3678_s1 + $0x220] sm:$0xff]   ;;  %v2863_v33 = vld [vmem:[%s3678_s1 + $0x210] sm:$0xff]  }
  0x1d   :  { %2509 = vmatpush3.bf16.msra.mxu1 %v2797_v27  ;;  %2488 = vmatprep.subr.bf16.mxu0 %v2798_v28  ;;  %v2856_v26 = vld [vmem:[%s3678_s1 + $0x2e0] sm:$0xff]   ;;  %v2858_v28 = vld [vmem:[%s3678_s1 + $0x258] sm:$0xff]   ;;  %v2865_v35 = vld [vmem:[%s3678_s1 + $0x290] sm:$0xff]  }
  0x1e   :  { %2510 = vmatprep.subr.bf16.mxu1 %v2799_v29  ;;  %v2857_v27 = vld [vmem:[%s3678_s1 + $0x2a0] sm:$0xff]   ;;  %v2859_v29 = vld [vmem:[%s3678_s1 + $0x218] sm:$0xff]   ;;  %v2867_v37 = vld [vmem:[%s3678_s1 + $0x208] sm:$0xff]  }
  0x1f   :  { %v2897_v5 = vld [vmem:[%s3678_s1 + $0x398] sm:$0xff]   ;;  %v2902_v10 = vld [vmem:[%s3678_s1 + $0x348] sm:$0xff]  }
  0x20   :  { %2489 = vmatpush3.bf16.msra.mxu0 %v2800_v30  ;;  %v2860_v30 = vld [vmem:[%s3678_s1 + $0x2d8] sm:$0xff]  }
  0x21   :  { %2511 = vmatpush3.bf16.msra.mxu1 %v2801_v31  ;;  %2518 = vmatprep.subr.bf16.mxu0 %v2806_v38  ;;  %v2861_v31 = vld [vmem:[%s3678_s1 + $0x298] sm:$0xff]   ;;  %v2868_v38 = vld [vmem:[%s3678_s1 + $0x2c8] sm:$0xff]  }
  0x22   :  { %2540 = vmatprep.subr.bf16.mxu1 %v2808_v40  ;;  %v2870_v40 = vld [vmem:[%s3678_s1 + $0x240] sm:$0xff]  }
  0x23   :  { %1747 = vmatmul.mubr.bf16.vlgmr.msra.gmra.mxu0 %v2249_v34  ;;  %v2864_v34 = vld [vmem:[%s3678_s1 + $0x2d0] sm:$0xff]  }
  0x24   :  { %1787 = vmatmul.mubr.bf16.vlgmr.msra.gmra.mxu1 %v2251_v36  ;;  %2519 = vmatpush3.bf16.msra.mxu0 %v2807_v39  ;;  %v2866_v36 = vld [vmem:[%s3678_s1 + $0x248] sm:$0xff]  }
  0x25   :  { %2541 = vmatpush3.bf16.msra.mxu1 %v2809_v41  ;;  %2520 = vmatprep.subr.bf16.mxu0 %v2810_v42  ;;  %v2869_v39 = vld [vmem:[%s3678_s1 + $0x288] sm:$0xff]   ;;  %v2871_v41 = vld [vmem:[%s3678_s1 + $0x200] sm:$0xff]  }
  0x26   :  { %2542 = vmatprep.subr.bf16.mxu1 %v2812_v44  ;;  %1826 = vmatprep.mubr.bf16.mxu0 %v2254_v6  ;;  %v2872_v42 = vld [vmem:[%s3678_s1 + $0x2c0] sm:$0xff]   ;;  %v2898_v6 = vld [vmem:[%s3678_s1 + $0x350] sm:$0xff]  }
  0x27   :  { %1866 = vmatprep.mubr.bf16.mxu1 %v2256_v12  ;;  %v2904_v12 = vld [vmem:[%s3678_s1 + $0x3c8] sm:$0xff]  }
  0x28   :  { %2521 = vmatpush3.bf16.msra.mxu0 %v2811_v43  ;;  %v17_v43 = vld [vmem:[%s3677_s0 + $0x20] sm:$0xff] }
  0x29   :  { %2543 = vmatpush3.bf16.msra.mxu1 %v2813_v45  ;;  %2522 = vmatprep.subr.bf16.mxu0 %v2814_v46  ;;  %v2257_v44 = vcombine.low %v17_v43, %v17_v43  ;;  %v2258_v45 = vcombine.high %v17_v43, %v17_v43  ;;  %v2875_v46 = vld [vmem:[%s3678_s1 + $0x280] sm:$0xff]   ;;  %v2933_v43 = vld [vmem:[%s3678_s1 + $0x498] sm:$0xff]  }
  0x2a   :  { %2544 = vmatprep.subr.bf16.mxu1 %v2816_v48  ;;  %v18_v48 = vld [vmem:[%s3677_s0 + $0x28] sm:$0xff] }
  0x2c   :  { %2523 = vmatpush3.bf16.msra.mxu0 %v2815_v47  ;;  %v2876_v47 = vld [vmem:[%s3678_s1 + $0x378] sm:$0xff]  }
  0x2d   :  { %2545 = vmatpush3.bf16.msra.mxu1 %v2817_v49  ;;  %2524 = vmatprep.subr.bf16.mxu0 %v2818_v50  ;;  %v2259_v49 = vcombine.low %v18_v48, %v18_v48  ;;  %v2260_v50 = vcombine.high %v18_v48, %v18_v48  ;;  %v2938_v48 = vld [vmem:[%s3678_s1 + $0x448] sm:$0xff]  }
  0x2e   :  { %2546 = vmatprep.subr.bf16.mxu1 %v2820_v52  ;;  %v2880_v52 = vld [vmem:[%s3678_s1 + $0x3f8] sm:$0xff]  }
  0x30   :  { %2525 = vmatpush3.bf16.msra.mxu0 %v2819_v51  ;;  %v2879_v51 = vld [vmem:[%s3678_s1 + $0x338] sm:$0xff]  }
  0x31   :  { %2547 = vmatpush3.bf16.msra.mxu1 %v2821_v53  ;;  %2526 = vmatprep.subr.bf16.mxu0 %v2822_v54  ;;  %v2881_v53 = vld [vmem:[%s3678_s1 + $0x3b8] sm:$0xff]   ;;  %v2882_v54 = vld [vmem:[%s3678_s1 + $0x370] sm:$0xff]  }
  0x32   :  { %2548 = vmatprep.subr.bf16.mxu1 %v2824_v56  ;;  %v2884_v56 = vld [vmem:[%s3678_s1 + $0x3f0] sm:$0xff]  }
  0x34   :  { %2527 = vmatpush3.bf16.msra.mxu0 %v2823_v55  ;;  %v2883_v55 = vld [vmem:[%s3678_s1 + $0x330] sm:$0xff]  }
  0x35   :  { %2549 = vmatpush3.bf16.msra.mxu1 %v2825_v57  ;;  %2528 = vmatprep.subr.bf16.mxu0 %v2826_v58  ;;  %v2885_v57 = vld [vmem:[%s3678_s1 + $0x3b0] sm:$0xff]   ;;  %v2886_v58 = vld [vmem:[%s3678_s1 + $0x368] sm:$0xff]  }
  0x36   :  { %2550 = vmatprep.subr.bf16.mxu1 %v2828_v60  ;;  %v2888_v60 = vld [vmem:[%s3678_s1 + $0x3e8] sm:$0xff]  }
  0x38   :  { %2529 = vmatpush3.bf16.msra.mxu0 %v2827_v59  ;;  %v2887_v59 = vld [vmem:[%s3678_s1 + $0x328] sm:$0xff]  }
  0x39   :  { %2551 = vmatpush3.bf16.msra.mxu1 %v2829_v61  ;;  %2530 = vmatprep.subr.bf16.mxu0 %v2830_v62  ;;  %v2889_v61 = vld [vmem:[%s3678_s1 + $0x3a8] sm:$0xff]   ;;  %v2890_v62 = vld [vmem:[%s3678_s1 + $0x360] sm:$0xff]  }
  0x3a   :  { %2552 = vmatprep.subr.bf16.mxu1 %v2832_v0  ;;  %v2892_v0 = vld [vmem:[%s3678_s1 + $0x3e0] sm:$0xff]  }
  0x3c   :  { %2531 = vmatpush3.bf16.msra.mxu0 %v2831_v63  ;;  %v2891_v63 = vld [vmem:[%s3678_s1 + $0x320] sm:$0xff]  }
  0x3d   :  { %2553 = vmatpush3.bf16.msra.mxu1 %v2833_v1  ;;  %2532 = vmatprep.subr.bf16.mxu0 %v2834_v2  ;;  %v2893_v1 = vld [vmem:[%s3678_s1 + $0x3a0] sm:$0xff]   ;;  %v2894_v2 = vld [vmem:[%s3678_s1 + $0x358] sm:$0xff]  }
  0x3e   :  { %2554 = vmatprep.subr.bf16.mxu1 %v2836_v4  ;;  %v2896_v4 = vld [vmem:[%s3678_s1 + $0x3d8] sm:$0xff]  }
  0x40   :  { %2533 = vmatpush3.bf16.msra.mxu0 %v2835_v3  ;;  %v2895_v3 = vld [vmem:[%s3678_s1 + $0x318] sm:$0xff]  }
  0x41   :  { %2555 = vmatpush3.bf16.msra.mxu1 %v2839_v7  ;;  %2562 = vmatprep.subr.bf16.mxu0 %v2840_v9  ;;  %v2899_v7 = vld [vmem:[%s3678_s1 + $0x310] sm:$0xff]  }
  0x42   :  { %2584 = vmatprep.subr.bf16.mxu1 %v2844_v14  ;;  %v2901_v9 = vld [vmem:[%s3678_s1 + $0x390] sm:$0xff]   ;;  %v2906_v14 = vld [vmem:[%s3678_s1 + $0x340] sm:$0xff]  }
  0x43   :  { %1827 = vmatmul.mubr.bf16.vlgmr.msra.gmra.mxu0 %v2253_v8  ;;  %v2900_v8 = vld [vmem:[%s3678_s1 + $0x3d0] sm:$0xff]  }
  0x44   :  { %2563 = vmatpush3.bf16.msra.mxu0 %v2843_v13  ;;  %1867 = vmatmul.mubr.bf16.vlgmr.msra.gmra.mxu1 %v2255_v11  ;;  %v2903_v11 = vld [vmem:[%s3678_s1 + $0x308] sm:$0xff]  }
  0x45   :  { %2585 = vmatpush3.bf16.msra.mxu1 %v2845_v15  ;;  %2564 = vmatprep.subr.bf16.mxu0 %v2846_v16  ;;  %v2905_v13 = vld [vmem:[%s3678_s1 + $0x388] sm:$0xff]   ;;  %v2907_v15 = vld [vmem:[%s3678_s1 + $0x300] sm:$0xff]  }
  0x46   :  { %2586 = vmatprep.subr.bf16.mxu1 %v2848_v18  ;;  %1906 = vmatprep.mubr.bf16.mxu0 %v2258_v45  ;;  %v2908_v16 = vld [vmem:[%s3678_s1 + $0x3c0] sm:$0xff]   ;;  %v2935_v45 = vld [vmem:[%s3678_s1 + $0x410] sm:$0xff]  }
  0x47   :  { %1946 = vmatprep.mubr.bf16.mxu1 %v2260_v50  ;;  %v2940_v50 = vld [vmem:[%s3678_s1 + $0x4c8] sm:$0xff]  }
  0x48   :  { %2565 = vmatpush3.bf16.msra.mxu0 %v2847_v17  ;;  %v19_v17 = vld [vmem:[%s3677_s0 + $0x30] sm:$0xff] }
  0x49   :  { %2587 = vmatpush3.bf16.msra.mxu1 %v2849_v19  ;;  %2566 = vmatprep.subr.bf16.mxu0 %v2850_v20  ;;  %v2261_v18 = vcombine.low %v19_v17, %v19_v17  ;;  %v2262_v19 = vcombine.high %v19_v17, %v19_v17  ;;  %v2911_v20 = vld [vmem:[%s3678_s1 + $0x380] sm:$0xff]   ;;  %v2969_v17 = vld [vmem:[%s3678_s1 + $0x598] sm:$0xff]  }
  0x4a   :  { %2588 = vmatprep.subr.bf16.mxu1 %v2852_v22  ;;  %v20_v22 = vld [vmem:[%s3677_s0 + $0x38] sm:$0xff] }
  0x4c   :  { %2567 = vmatpush3.bf16.msra.mxu0 %v2851_v21  ;;  %v2912_v21 = vld [vmem:[%s3678_s1 + $0x478] sm:$0xff]  }
  0x4d   :  { %2589 = vmatpush3.bf16.msra.mxu1 %v2853_v23  ;;  %2568 = vmatprep.subr.bf16.mxu0 %v2854_v24  ;;  %v2263_v23 = vcombine.low %v20_v22, %v20_v22  ;;  %v2264_v24 = vcombine.high %v20_v22, %v20_v22  ;;  %v2974_v22 = vld [vmem:[%s3678_s1 + $0x548] sm:$0xff]  }
  0x4e   :  { %2590 = vmatprep.subr.bf16.mxu1 %v2856_v26  ;;  %v2916_v26 = vld [vmem:[%s3678_s1 + $0x4f8] sm:$0xff]  }
  0x50   :  { %2569 = vmatpush3.bf16.msra.mxu0 %v2855_v25  ;;  %v2915_v25 = vld [vmem:[%s3678_s1 + $0x438] sm:$0xff]  }
  0x51   :  { %2591 = vmatpush3.bf16.msra.mxu1 %v2857_v27  ;;  %2570 = vmatprep.subr.bf16.mxu0 %v2858_v28  ;;  %v2917_v27 = vld [vmem:[%s3678_s1 + $0x4b8] sm:$0xff]   ;;  %v2918_v28 = vld [vmem:[%s3678_s1 + $0x470] sm:$0xff]  }
  0x52   :  { %2592 = vmatprep.subr.bf16.mxu1 %v2860_v30  ;;  %v2920_v30 = vld [vmem:[%s3678_s1 + $0x4f0] sm:$0xff]  }
  0x54   :  { %2571 = vmatpush3.bf16.msra.mxu0 %v2859_v29  ;;  %v2919_v29 = vld [vmem:[%s3678_s1 + $0x430] sm:$0xff]  }
  0x55   :  { %2593 = vmatpush3.bf16.msra.mxu1 %v2861_v31  ;;  %2572 = vmatprep.subr.bf16.mxu0 %v2862_v32  ;;  %v2921_v31 = vld [vmem:[%s3678_s1 + $0x4b0] sm:$0xff]   ;;  %v2922_v32 = vld [vmem:[%s3678_s1 + $0x468] sm:$0xff]  }
  0x56   :  { %2594 = vmatprep.subr.bf16.mxu1 %v2864_v34  ;;  %v2924_v34 = vld [vmem:[%s3678_s1 + $0x4e8] sm:$0xff]  }
  0x58   :  { %2573 = vmatpush3.bf16.msra.mxu0 %v2863_v33  ;;  %v2923_v33 = vld [vmem:[%s3678_s1 + $0x428] sm:$0xff]  }
  0x59   :  { %2595 = vmatpush3.bf16.msra.mxu1 %v2865_v35  ;;  %2574 = vmatprep.subr.bf16.mxu0 %v2866_v36  ;;  %v2925_v35 = vld [vmem:[%s3678_s1 + $0x4a8] sm:$0xff]   ;;  %v2926_v36 = vld [vmem:[%s3678_s1 + $0x460] sm:$0xff]  }
  0x5a   :  { %2596 = vmatprep.subr.bf16.mxu1 %v2868_v38  ;;  %v2928_v38 = vld [vmem:[%s3678_s1 + $0x4e0] sm:$0xff]  }
  0x5c   :  { %2575 = vmatpush3.bf16.msra.mxu0 %v2867_v37  ;;  %v2927_v37 = vld [vmem:[%s3678_s1 + $0x420] sm:$0xff]  }
  0x5d   :  { %2597 = vmatpush3.bf16.msra.mxu1 %v2869_v39  ;;  %2576 = vmatprep.subr.bf16.mxu0 %v2870_v40  ;;  %v2929_v39 = vld [vmem:[%s3678_s1 + $0x4a0] sm:$0xff]   ;;  %v2930_v40 = vld [vmem:[%s3678_s1 + $0x458] sm:$0xff]  }
  0x5e   :  { %2598 = vmatprep.subr.bf16.mxu1 %v2872_v42  ;;  %v2932_v42 = vld [vmem:[%s3678_s1 + $0x4d8] sm:$0xff]  }
  0x60   :  { %2577 = vmatpush3.bf16.msra.mxu0 %v2871_v41  ;;  %v2931_v41 = vld [vmem:[%s3678_s1 + $0x418] sm:$0xff]  }
  0x61   :  { %2599 = vmatpush3.bf16.msra.mxu1 %v2875_v46  ;;  %2606 = vmatprep.subr.bf16.mxu0 %v2876_v47  ;;  %v2936_v46 = vld [vmem:[%s3678_s1 + $0x4d0] sm:$0xff]  }
  0x62   :  { %2628 = vmatprep.subr.bf16.mxu1 %v2880_v52  ;;  %v2937_v47 = vld [vmem:[%s3678_s1 + $0x490] sm:$0xff]   ;;  %v2942_v52 = vld [vmem:[%s3678_s1 + $0x440] sm:$0xff]  }
  0x63   :  { %1907 = vmatmul.mubr.bf16.vlgmr.msra.gmra.mxu0 %v2257_v44  ;;  %v2934_v44 = vld [vmem:[%s3678_s1 + $0x450] sm:$0xff]  }
  0x64   :  { %2607 = vmatpush3.bf16.msra.mxu0 %v2879_v51  ;;  %1947 = vmatmul.mubr.bf16.vlgmr.msra.gmra.mxu1 %v2259_v49  ;;  %v2939_v49 = vld [vmem:[%s3678_s1 + $0x408] sm:$0xff]  }
  0x65   :  { %2629 = vmatpush3.bf16.msra.mxu1 %v2881_v53  ;;  %2608 = vmatprep.subr.bf16.mxu0 %v2882_v54  ;;  %v2941_v51 = vld [vmem:[%s3678_s1 + $0x488] sm:$0xff]   ;;  %v2943_v53 = vld [vmem:[%s3678_s1 + $0x400] sm:$0xff]  }
  0x66   :  { %2630 = vmatprep.subr.bf16.mxu1 %v2884_v56  ;;  %1986 = vmatprep.mubr.bf16.mxu0 %v2262_v19  ;;  %v2944_v54 = vld [vmem:[%s3678_s1 + $0x4c0] sm:$0xff]   ;;  %v2971_v19 = vld [vmem:[%s3678_s1 + $0x510] sm:$0xff]  }
  0x67   :  { %2026 = vmatprep.mubr.bf16.mxu1 %v2264_v24  ;;  %v2976_v24 = vld [vmem:[%s3678_s1 + $0x5c8] sm:$0xff]  }
  0x68   :  { %2609 = vmatpush3.bf16.msra.mxu0 %v2883_v55  ;;  %v21_v55 = vld [vmem:[%s3677_s0 + $0x40] sm:$0xff] }
  0x69   :  { %2631 = vmatpush3.bf16.msra.mxu1 %v2885_v57  ;;  %2610 = vmatprep.subr.bf16.mxu0 %v2886_v58  ;;  %v2265_v56 = vcombine.low %v21_v55, %v21_v55  ;;  %v2266_v57 = vcombine.high %v21_v55, %v21_v55  ;;  %v2947_v58 = vld [vmem:[%s3678_s1 + $0x480] sm:$0xff]  }
  0x6a   :  { %2632 = vmatprep.subr.bf16.mxu1 %v2888_v60  ;;  %v22_v60 = vld [vmem:[%s3677_s0 + $0x48] sm:$0xff] }
  0x6c   :  { %2611 = vmatpush3.bf16.msra.mxu0 %v2887_v59  ;;  %v2948_v59 = vld [vmem:[%s3678_s1 + $0x578] sm:$0xff]  }
  0x6d   :  { %2633 = vmatpush3.bf16.msra.mxu1 %v2889_v61  ;;  %2612 = vmatprep.subr.bf16.mxu0 %v2890_v62  ;;  %v2267_v61 = vcombine.low %v22_v60, %v22_v60  ;;  %v2268_v62 = vcombine.high %v22_v60, %v22_v60 }
  0x6e   :  { %2634 = vmatprep.subr.bf16.mxu1 %v2892_v0  ;;  %v2952_v0 = vld [vmem:[%s3678_s1 + $0x5f8] sm:$0xff]  }
  0x70   :  { %2613 = vmatpush3.bf16.msra.mxu0 %v2891_v63  ;;  %v2951_v63 = vld [vmem:[%s3678_s1 + $0x538] sm:$0xff]  }
  0x71   :  { %2635 = vmatpush3.bf16.msra.mxu1 %v2893_v1  ;;  %2614 = vmatprep.subr.bf16.mxu0 %v2894_v2  ;;  %v2953_v1 = vld [vmem:[%s3678_s1 + $0x5b8] sm:$0xff]   ;;  %v2954_v2 = vld [vmem:[%s3678_s1 + $0x570] sm:$0xff]  }
  0x72   :  { %2636 = vmatprep.subr.bf16.mxu1 %v2896_v4  ;;  %v2956_v4 = vld [vmem:[%s3678_s1 + $0x5f0] sm:$0xff]  }
  0x74   :  { %2615 = vmatpush3.bf16.msra.mxu0 %v2895_v3  ;;  %v2955_v3 = vld [vmem:[%s3678_s1 + $0x530] sm:$0xff]  }
  0x75   :  { %2637 = vmatpush3.bf16.msra.mxu1 %v2897_v5  ;;  %2616 = vmatprep.subr.bf16.mxu0 %v2898_v6  ;;  %v2957_v5 = vld [vmem:[%s3678_s1 + $0x5b0] sm:$0xff]   ;;  %v2958_v6 = vld [vmem:[%s3678_s1 + $0x568] sm:$0xff]  }
  0x76   :  { %2638 = vmatprep.subr.bf16.mxu1 %v2900_v8  ;;  %v2960_v8 = vld [vmem:[%s3678_s1 + $0x5e8] sm:$0xff]  }
  0x78   :  { %2617 = vmatpush3.bf16.msra.mxu0 %v2899_v7  ;;  %v2959_v7 = vld [vmem:[%s3678_s1 + $0x528] sm:$0xff]  }
  0x79   :  { %2639 = vmatpush3.bf16.msra.mxu1 %v2901_v9  ;;  %2618 = vmatprep.subr.bf16.mxu0 %v2902_v10  ;;  %v2961_v9 = vld [vmem:[%s3678_s1 + $0x5a8] sm:$0xff]   ;;  %v2962_v10 = vld [vmem:[%s3678_s1 + $0x560] sm:$0xff]  }
  0x7a   :  { %2640 = vmatprep.subr.bf16.mxu1 %v2904_v12  ;;  %v2964_v12 = vld [vmem:[%s3678_s1 + $0x5e0] sm:$0xff]  }
  0x7c   :  { %2619 = vmatpush3.bf16.msra.mxu0 %v2903_v11  ;;  %v2963_v11 = vld [vmem:[%s3678_s1 + $0x520] sm:$0xff]  }
  0x7d   :  { %2641 = vmatpush3.bf16.msra.mxu1 %v2905_v13  ;;  %2620 = vmatprep.subr.bf16.mxu0 %v2906_v14  ;;  %v2965_v13 = vld [vmem:[%s3678_s1 + $0x5a0] sm:$0xff]   ;;  %v2966_v14 = vld [vmem:[%s3678_s1 + $0x558] sm:$0xff]  }
  0x7e   :  { %2642 = vmatprep.subr.bf16.mxu1 %v2908_v16  ;;  %v2968_v16 = vld [vmem:[%s3678_s1 + $0x5d8] sm:$0xff]  }
  0x80   :  { %2621 = vmatpush3.bf16.msra.mxu0 %v2907_v15  ;;  %v2967_v15 = vld [vmem:[%s3678_s1 + $0x518] sm:$0xff]  }
  0x81   :  { %2643 = vmatpush3.bf16.msra.mxu1 %v2911_v20  ;;  %2650 = vmatprep.subr.bf16.mxu0 %v2912_v21  ;;  %v2972_v20 = vld [vmem:[%s3678_s1 + $0x5d0] sm:$0xff]  }
  0x82   :  { %2672 = vmatprep.subr.bf16.mxu1 %v2916_v26  ;;  %v2973_v21 = vld [vmem:[%s3678_s1 + $0x590] sm:$0xff]   ;;  %v2978_v26 = vld [vmem:[%s3678_s1 + $0x540] sm:$0xff]  }
  0x83   :  { %1987 = vmatmul.mubr.bf16.vlgmr.msra.gmra.mxu0 %v2261_v18  ;;  %v2970_v18 = vld [vmem:[%s3678_s1 + $0x550] sm:$0xff]  }
  0x84   :  { %2651 = vmatpush3.bf16.msra.mxu0 %v2915_v25  ;;  %2027 = vmatmul.mubr.bf16.vlgmr.msra.gmra.mxu1 %v2263_v23  ;;  %v2975_v23 = vld [vmem:[%s3678_s1 + $0x508] sm:$0xff]  }
  0x85   :  { %2673 = vmatpush3.bf16.msra.mxu1 %v2917_v27  ;;  %2652 = vmatprep.subr.bf16.mxu0 %v2918_v28  ;;  %v2977_v25 = vld [vmem:[%s3678_s1 + $0x588] sm:$0xff]   ;;  %v2979_v27 = vld [vmem:[%s3678_s1 + $0x500] sm:$0xff]  }
  0x86   :  { %2674 = vmatprep.subr.bf16.mxu1 %v2920_v30  ;;  %2066 = vmatprep.mubr.bf16.mxu0 %v2266_v57  ;;  %v2980_v28 = vld [vmem:[%s3678_s1 + $0x5c0] sm:$0xff]  }
  0x87   :  { %2106 = vmatprep.mubr.bf16.mxu1 %v2268_v62 }
  0x88   :  { %2653 = vmatpush3.bf16.msra.mxu0 %v2919_v29  ;;  %v23_v29 = vld [vmem:[%s3677_s0 + $0x50] sm:$0xff] }
  0x89   :  { %2675 = vmatpush3.bf16.msra.mxu1 %v2921_v31  ;;  %2654 = vmatprep.subr.bf16.mxu0 %v2922_v32  ;;  %v2269_v30 = vcombine.low %v23_v29, %v23_v29  ;;  %v2270_v31 = vcombine.high %v23_v29, %v23_v29  ;;  %v2983_v32 = vld [vmem:[%s3678_s1 + $0x580] sm:$0xff]  }
  0x8a   :  { %2676 = vmatprep.subr.bf16.mxu1 %v2924_v34  ;;  %v3017_v34 = vmov 0.0  }
  0x8c   :  { %2655 = vmatpush3.bf16.msra.mxu0 %v2923_v33  ;;  %v24_v33 = vld [vmem:[%s3677_s0 + $0x58] sm:$0xff] }
  0x8d   :  { %2677 = vmatpush3.bf16.msra.mxu1 %v2925_v35  ;;  %2656 = vmatprep.subr.bf16.mxu0 %v2926_v36  ;;  %v2271_v35 = vcombine.low %v24_v33, %v24_v33  ;;  %v2272_v36 = vcombine.high %v24_v33, %v24_v33 }
  0x8e   :  { %2678 = vmatprep.subr.bf16.mxu1 %v2928_v38  ;;  %v2987_v38 = vld [vmem:[%s3678_s1 + $0x630] sm:$0xff]  }
  0x90   :  { %2657 = vmatpush3.bf16.msra.mxu0 %v2927_v37  ;;  %v2986_v37 = vld [vmem:[%s3678_s1 + $0x638] sm:$0xff]  }
  0x91   :  { %2679 = vmatpush3.bf16.msra.mxu1 %v2929_v39  ;;  %2658 = vmatprep.subr.bf16.mxu0 %v2930_v40  ;;  %v2988_v39 = vld [vmem:[%s3678_s1 + $0x628] sm:$0xff]  }
  0x92   :  { %2680 = vmatprep.subr.bf16.mxu1 %v2932_v42 }
  0x94   :  { %2659 = vmatpush3.bf16.msra.mxu0 %v2931_v41 }
  0x95   :  { %2681 = vmatpush3.bf16.msra.mxu1 %v2933_v43  ;;  %2660 = vmatprep.subr.bf16.mxu0 %v2934_v44 }
  0x96   :  { %2682 = vmatprep.subr.bf16.mxu1 %v2936_v46 }
  0x98   :  { %2661 = vmatpush3.bf16.msra.mxu0 %v2935_v45 }
  0x99   :  { %2683 = vmatpush3.bf16.msra.mxu1 %v2937_v47  ;;  %2662 = vmatprep.subr.bf16.mxu0 %v2938_v48 }
  0x9a   :  { %2684 = vmatprep.subr.bf16.mxu1 %v2940_v50 }
  0x9c   :  { %2663 = vmatpush3.bf16.msra.mxu0 %v2939_v49 }
  0x9d   :  { %2685 = vmatpush3.bf16.msra.mxu1 %v2941_v51  ;;  %2664 = vmatprep.subr.bf16.mxu0 %v2942_v52 }
  0x9e   :  { %2686 = vmatprep.subr.bf16.mxu1 %v2944_v54 }
  0xa0   :  { %2665 = vmatpush3.bf16.msra.mxu0 %v2943_v53 }
  0xa1   :  { %2687 = vmatpush3.bf16.msra.mxu1 %v2947_v58  ;;  %2694 = vmatprep.subr.bf16.mxu0 %v2948_v59 }
  0xa2   :  { %2716 = vmatprep.subr.bf16.mxu1 %v2952_v0 }
  0xa3   :  { %2067 = vmatmul.mubr.bf16.vlgmr.msra.gmra.mxu0 %v2265_v56 }
  0xa4   :  { %2695 = vmatpush3.bf16.msra.mxu0 %v2951_v63  ;;  %2107 = vmatmul.mubr.bf16.vlgmr.msra.gmra.mxu1 %v2267_v61 }
  0xa5   :  { %2717 = vmatpush3.bf16.msra.mxu1 %v2953_v1  ;;  %2696 = vmatprep.subr.bf16.mxu0 %v2954_v2 }
  0xa6   :  { %2718 = vmatprep.subr.bf16.mxu1 %v2956_v4  ;;  %2146 = vmatprep.mubr.bf16.mxu0 %v2270_v31 }
  0xa7   :  { %2186 = vmatprep.mubr.bf16.mxu1 %v2272_v36 }
  0xa8   :  { %2697 = vmatpush3.bf16.msra.mxu0 %v2955_v3 }
  0xa9   :  { %2719 = vmatpush3.bf16.msra.mxu1 %v2957_v5  ;;  %2698 = vmatprep.subr.bf16.mxu0 %v2958_v6 }
  0xaa   :  { %2720 = vmatprep.subr.bf16.mxu1 %v2960_v8 }
  0xac   :  { %2699 = vmatpush3.bf16.msra.mxu0 %v2959_v7 }
  0xad   :  { %2721 = vmatpush3.bf16.msra.mxu1 %v2961_v9  ;;  %2700 = vmatprep.subr.bf16.mxu0 %v2962_v10 }
  0xae   :  { %2722 = vmatprep.subr.bf16.mxu1 %v2964_v12 }
  0xb0   :  { %2701 = vmatpush3.bf16.msra.mxu0 %v2963_v11 }
  0xb1   :  { %2723 = vmatpush3.bf16.msra.mxu1 %v2965_v13  ;;  %2702 = vmatprep.subr.bf16.mxu0 %v2966_v14 }
  0xb2   :  { %2724 = vmatprep.subr.bf16.mxu1 %v2968_v16 }
  0xb4   :  { %2703 = vmatpush3.bf16.msra.mxu0 %v2967_v15 }
  0xb5   :  { %2725 = vmatpush3.bf16.msra.mxu1 %v2969_v17  ;;  %2704 = vmatprep.subr.bf16.mxu0 %v2970_v18 }
  0xb6   :  { %2726 = vmatprep.subr.bf16.mxu1 %v2972_v20 }
  0xb8   :  { %2705 = vmatpush3.bf16.msra.mxu0 %v2971_v19 }
  0xb9   :  { %2727 = vmatpush3.bf16.msra.mxu1 %v2973_v21  ;;  %2706 = vmatprep.subr.bf16.mxu0 %v2974_v22 }
  0xba   :  { %2728 = vmatprep.subr.bf16.mxu1 %v2976_v24 }
  0xbc   :  { %2707 = vmatpush3.bf16.msra.mxu0 %v2975_v23 }
  0xbd   :  { %2729 = vmatpush3.bf16.msra.mxu1 %v2977_v25  ;;  %2708 = vmatprep.subr.bf16.mxu0 %v2978_v26 }
  0xbe   :  { %2730 = vmatprep.subr.bf16.mxu1 %v2980_v28 }
  0xc0   :  { %2709 = vmatpush3.bf16.msra.mxu0 %v2979_v27 }
  0xc1   :  { %2747 = vmatprep.subr.bf16.mxu0 %v3017_v34  ;;  %2731 = vmatpush3.bf16.msra.mxu1 %v2983_v32 }
  0xc3   :  { %2147 = vmatmul.mubr.bf16.vlgmr.msra.gmra.mxu0 %v2269_v30 }
  0xc4   :  { %2748 = vmatpush3.bf16.msra.mxu0 %v2986_v37  ;;  %2763 = vmatprep.mubr.msk.bf16.mxu0 %vm3018_vm0, %v3017_v34 }
  0xc5   :  { %2187 = vmatmul.mubr.bf16.vlgmr.msra.gmra.mxu1 %v2271_v35  ;;  %2749 = vmatprep.subr.bf16.mxu0 %v3017_v34 }
  0xc8   :  { %2750 = vmatpush3.bf16.msra.mxu0 %v2987_v38 }
  0xc9   :  { %2751 = vmatprep.subr.bf16.mxu0 %v3017_v34 }
  0xca   :  { %7 = vsyncpa [#allocation3], 0  ;;  %v2989_v40 = vld [vmem:[%s3678_s1 + $0x620] sm:$0xff]   ;;  %v2990_v41 = vld [vmem:[%s3678_s1 + $0x618] sm:$0xff]  }
  0xcb   :  { %v2991_v42 = vld [vmem:[%s3678_s1 + $0x610] sm:$0xff]   ;;  %v2992_v43 = vld [vmem:[%s3678_s1 + $0x608] sm:$0xff]   ;;  %v2993_v44 = vld [vmem:[%s3678_s1 + $0x600] sm:$0xff]  }
  0xcc   :  { %2752 = vmatpush3.bf16.msra.mxu0 %v2988_v39  ;;  %v2994_v45 = vld [vmem:[%s3677_s0 + $0x60] ss:$0 sps:$4 sm:$0xff]   ;;  %s3019_s0 = smov [#allocation2]  }
  0xcd   :  { %2753 = vmatprep.subr.bf16.mxu0 %v3017_v34  ;;  %s2241_s1 = sshll.u32 %s3019_s0, 4  ;;  %s2242_s1 = int_to_ptr.vmem [resolvable:$true] %s2241_s1 }
  0xce   :  { %s2995_s15 = scalar_lea.vmem %s2242_s1, 128  ;;  %p3000_p1 = scmp.lt.s32.totalorder %s2242_s1, %s2242_s1 }
  0xcf   :  { %p2996_p0 = scmp.ne.s32.totalorder %s2242_s1, %s2995_s15  ;;  %p3001_p2 = scmp.lt.s32.totalorder %s2995_s15, %s2995_s15 }
  0xd0   :  { %2754 = vmatpush3.bf16.msra.mxu0 %v2989_v40 }
  0xd1   :  { %2755 = vmatprep.subr.bf16.mxu0 %v3017_v34  ;;  %p3002_p3 = por %p3001_p2, %p3000_p1 }
  0xd3   :  { %p3003_p4 = pnand %p3002_p3, %p2996_p0 }
  0xd4   :  { %2756 = vmatpush3.bf16.msra.mxu0 %v2990_v41 }
  0xd5   :  { %2757 = vmatprep.subr.bf16.mxu0 %v3017_v34 }
  0xd8   :  { %2758 = vmatpush3.bf16.msra.mxu0 %v2991_v42 }
  0xd9   :  { %2759 = vmatprep.subr.bf16.mxu0 %v3017_v34 }
  0xdc   :  { %2760 = vmatpush3.bf16.msra.mxu0 %v2992_v43 }
  0xdd   :  { %2761 = vmatprep.subr.bf16.mxu0 %v3017_v34 }
  0xe0   :  { %2762 = vmatpush3.bf16.msra.mxu0 %v2993_v44 }
  0xe3   :  { %v2490_v46 = vpop.f32.mrf.mxu0  ;;  %2764 = vmatmul.mubr.bf16.vlgmr.msra.gmra.mxu0 %v2994_v45 }
  0xe4   :  { %v2512_v47 = vpop.f32.mrf.mxu1 }
  0xe5   :  { %v2491_v48 = vpop.f32.mrf.mxu0 }
  0xe6   :  { %v2513_v49 = vpop.f32.mrf.mxu1  ;;  %v2492_v50 = vadd.f32 %v2491_v48, %v2490_v46 }
  0xe7   :  { %v2514_v51 = vadd.f32 %v2513_v49, %v2512_v47  ;;  %v2493_v52 = vpop.f32.mrf.mxu0 }
  0xe8   :  { %v2515_v53 = vpop.f32.mrf.mxu1 }
  0xe9   :  { %v1789_v54 = vadd.f32 %v2514_v51, %v2492_v50  ;;  %v2494_v55 = vpop.f32.mrf.mxu0 }
  0xea   :  { %v2516_v56 = vpop.f32.mrf.mxu1 }
 0x103   :  { %v2534_v57 = vpop.f32.mrf.mxu0 }
 0x104   :  { %v2556_v58 = vpop.f32.mrf.mxu1 }
 0x105   :  { %v2535_v59 = vpop.f32.mrf.mxu0 }
 0x106   :  { %v2536_v60 = vadd.f32 %v2535_v59, %v2534_v57  ;;  %v2557_v61 = vpop.f32.mrf.mxu1 }
 0x107   :  { %v2537_v62 = vpop.f32.mrf.mxu0  ;;  %v2558_v63 = vadd.f32 %v2557_v61, %v2556_v58 }
 0x108   :  { %v1829_v0 = vadd.f32 %v2536_v60, %v1789_v54  ;;  %v2559_v1 = vpop.f32.mrf.mxu1 }
 0x109   :  { %v2538_v2 = vpop.f32.mrf.mxu0 }
 0x10a   :  { %v1869_v3 = vadd.f32 %v2558_v63, %v1829_v0  ;;  %v2560_v4 = vpop.f32.mrf.mxu1 }
 0x123   :  { %v2578_v5 = vpop.f32.mrf.mxu0 }
 0x124   :  { %v2600_v7 = vpop.f32.mrf.mxu1 }
 0x125   :  { %v2579_v6 = vpop.f32.mrf.mxu0 }
 0x126   :  { %v2580_v8 = vadd.f32 %v2579_v6, %v2578_v5  ;;  %v2601_v10 = vpop.f32.mrf.mxu1 }
 0x127   :  { %v2581_v9 = vpop.f32.mrf.mxu0  ;;  %v2602_v12 = vadd.f32 %v2601_v10, %v2600_v7 }
 0x128   :  { %v1909_v11 = vadd.f32 %v2580_v8, %v1869_v3  ;;  %v2603_v14 = vpop.f32.mrf.mxu1 }
 0x129   :  { %v2582_v13 = vpop.f32.mrf.mxu0 }
 0x12a   :  { %v1949_v15 = vadd.f32 %v2602_v12, %v1909_v11  ;;  %v2604_v16 = vpop.f32.mrf.mxu1 }
 0x143   :  { %v2622_v17 = vpop.f32.mrf.mxu0 }
 0x144   :  { %v2644_v19 = vpop.f32.mrf.mxu1 }
 0x145   :  { %v2623_v18 = vpop.f32.mrf.mxu0 }
 0x146   :  { %v2624_v20 = vadd.f32 %v2623_v18, %v2622_v17  ;;  %v2645_v22 = vpop.f32.mrf.mxu1 }
 0x147   :  { %v2625_v21 = vpop.f32.mrf.mxu0  ;;  %v2646_v24 = vadd.f32 %v2645_v22, %v2644_v19 }
 0x148   :  { %v1989_v23 = vadd.f32 %v2624_v20, %v1949_v15  ;;  %v2647_v26 = vpop.f32.mrf.mxu1 }
 0x149   :  { %v2626_v25 = vpop.f32.mrf.mxu0 }
 0x14a   :  { %v2029_v27 = vadd.f32 %v2646_v24, %v1989_v23  ;;  %v2648_v28 = vpop.f32.mrf.mxu1 }
 0x163   :  { %v2666_v29 = vpop.f32.mrf.mxu0 }
 0x164   :  { %v2688_v31 = vpop.f32.mrf.mxu1 }
 0x165   :  { %v2667_v30 = vpop.f32.mrf.mxu0 }
 0x166   :  { %v2689_v33 = vpop.f32.mrf.mxu1  ;;  %v2668_v45 = vadd.f32 %v2667_v30, %v2666_v29 }
 0x167   :  { %v2669_v32 = vpop.f32.mrf.mxu0  ;;  %v2690_v47 = vadd.f32 %v2689_v33, %v2688_v31 }
 0x168   :  { %v2691_v35 = vpop.f32.mrf.mxu1  ;;  %v2069_v46 = vadd.f32 %v2668_v45, %v2029_v27 }
 0x169   :  { %v2670_v34 = vpop.f32.mrf.mxu0 }
 0x16a   :  { %v2692_v36 = vpop.f32.mrf.mxu1  ;;  %v2109_v49 = vadd.f32 %v2690_v47, %v2069_v46 }
 0x183   :  { %v2710_v37 = vpop.f32.mrf.mxu0 }
 0x185   :  { %v2711_v38 = vpop.f32.mrf.mxu0  ;;  %v2732_v39 = vpop.f32.mrf.mxu1 }
 0x186   :  { %v2712_v48 = vadd.f32 %v2711_v38, %v2710_v37 }
 0x187   :  { %v2713_v40 = vpop.f32.mrf.mxu0  ;;  %v2733_v41 = vpop.f32.mrf.mxu1 }
 0x188   :  { %v2149_v50 = vadd.f32 %v2712_v48, %v2109_v49  ;;  %v2734_v51 = vadd.f32 %v2733_v41, %v2732_v39 }
 0x189   :  { %v2714_v42 = vpop.f32.mrf.mxu0  ;;  %v2735_v43 = vpop.f32.mrf.mxu1 }
 0x18a   :  { %v2189_v52 = vadd.f32 %v2734_v51, %v2149_v50 }
 0x18b   :  { %v2736_v44 = vpop.f32.mrf.mxu1 }
 0x1a3   :  { %v2228_v53 = vpop.f32.mrf.mxu0 }
 0x1a4   :  { %v2229_v54 = vadd.f32 %v2228_v53, %v2189_v52 }
 0x1a5   :  { %v2765_v55 = vpop.f32.mrf.mxu0 }
 0x1a6   :  { %2234 = vst [vmem:[#allocation2] sm:$0xff] %v2229_v54 }
 0x1a7   :  { %v2231_v56 = vpop.f32.mrf.mxu0 }
 0x1a8   :  { %3006 = shalt.err (!%p3003_p4)
}
 0x1a9   :  { %2244 = dma.vmem_to_hbm [thread:$0]  %s2242_s1, 128, %s3679_s2, [#allocation3]   ;;  %v2766_v57 = vpop.f32.mrf.mxu0 }
 0x1aa   :  { %3015 = dma.done.wait [#allocation3], 128  }
 0x1ab   :  { %3016 = vsyncadd [#allocation3], 4294967168 }
 0x1ac   :  { %2248 = vsyncpa [#allocation3], 1 }

</bundles_post_ra>
